<compile_context>
chip_gen: v7x
topology: tpu7x:2x2x1
jax: 0.10.0
libtpu: 0.0.40
codegen_flags: <defaults>
</compile_context>

<pallas_src>
import functools

import jax
import jax.numpy as jnp
from jax.experimental import pallas as pl
from jax.experimental.pallas import tpu as pltpu

# ----------------------------- config (small) -----------------------------
VOCAB = 64
D_MODEL = 32
N_HEADS = 4
D_KV = 8                      # inner_dim = N_HEADS * D_KV = 32
D_FF = 64
N_LAYERS = 2
NUM_BUCKETS = 8
MAX_DISTANCE = 16
EPS = 1e-6
MASK_NEG = -1e9               # finite large-negative (see header comment)


# ------------------------------ Pallas kernel -------------------------------
def _layernorm(x, g, b, eps):
    # Standard nn.LayerNorm (the spec module uses nn.LayerNorm, not RMSNorm).
    # x: (S, D) f32, g/b: (1, D) f32
    mu = jnp.mean(x, axis=-1, keepdims=True)
    var = jnp.mean((x - mu) ** 2, axis=-1, keepdims=True)
    return (x - mu) * jax.lax.rsqrt(var + eps) * g + b


def t5_stack_kernel(h_ref, mask_ref, bias_ref,
                    ln1_g_ref, ln1_b_ref, wqkv_ref, wo_ref,
                    ln2_g_ref, ln2_b_ref, wi01_ref, wo_ff_ref,
                    fln_g_ref, fln_b_ref, o_ref,
                    *, eps, n_layers, n_heads, d_kv, d_ff):
    # One batch element per grid step; ALL layers + final LN run here.
    S = h_ref.shape[1]
    inner = n_heads * d_kv

    x = h_ref[0].astype(jnp.float32)                          # (S, D) residual
    # additive key mask, (1, S_k); shared by every layer
    madd = (1.0 - mask_ref[0].astype(jnp.float32)) * MASK_NEG
    # relative-position bias, pre-stacked as (H*S, S) in the wrapper
    bias = bias_ref[...].astype(jnp.float32)

    for l in range(n_layers):                                 # static unroll
        # ---- LayerNorm 1 ----
        normed = _layernorm(x,
                            ln1_g_ref[l].astype(jnp.float32),
                            ln1_b_ref[l].astype(jnp.float32), eps)

        # ---- fused Q|K|V projection: one MXU pass, N = 3*inner ----
        qkv = jnp.dot(normed, wqkv_ref[l],
                      preferred_element_type=jnp.float32)     # (S, 3*inner)

        # ---- scores for all heads, stacked along SUBLANES (vreg-aligned) ----
        # T5: no 1/sqrt(d_kv) scaling (folded into init) -- do not "fix".
        scores = []
        for h in range(n_heads):
            qh = qkv[:, h * d_kv:(h + 1) * d_kv]                      # (S, DK)
            kh = qkv[:, inner + h * d_kv:inner + (h + 1) * d_kv]
            scores.append(jnp.dot(qh, kh.T,
                                  preferred_element_type=jnp.float32))
        s = jnp.concatenate(scores, axis=0)                   # (H*S, S)
        s = s + bias + madd

        # ---- single batched softmax over all heads ----
        s = s - jnp.max(s, axis=-1, keepdims=True)
        p = jnp.exp(s)
        p = p * pl.reciprocal(jnp.sum(p, axis=-1, keepdims=True), approx=True)

        # ---- PV + output-proj accumulated per head (no lane concat) ----
        wo_l = wo_ref[l]                                      # (inner, D)
        for h in range(n_heads):
            ph = p[h * S:(h + 1) * S, :]                      # (S, S) sublane slice
            vh = qkv[:, 2 * inner + h * d_kv:2 * inner + (h + 1) * d_kv]
            ctx = jnp.dot(ph, vh, preferred_element_type=jnp.float32)  # (S, DK)
            x = x + jnp.dot(ctx, wo_l[h * d_kv:(h + 1) * d_kv, :],
                            preferred_element_type=jnp.float32)

        # ---- LayerNorm 2 + gated-GELU FFN + residual ----
        normed2 = _layernorm(x,
                             ln2_g_ref[l].astype(jnp.float32),
                             ln2_b_ref[l].astype(jnp.float32), eps)
        hi = jnp.dot(normed2, wi01_ref[l],
                     preferred_element_type=jnp.float32)      # (S, 2*d_ff)
        hg = jax.nn.gelu(hi[:, :d_ff], approximate=True) * hi[:, d_ff:]
        x = x + jnp.dot(hg, wo_ff_ref[l], preferred_element_type=jnp.float32)

    # ---- final LayerNorm ----
    x = _layernorm(x,
                   fln_g_ref[...].astype(jnp.float32),
                   fln_b_ref[...].astype(jnp.float32), eps)
    o_ref[0] = x.astype(o_ref.dtype)


# ------------------------------- wrapper ------------------------------------
def pallas_t5_stack(x, attention_mask, rel_bias_hs, stack, final_g, final_b):
    """One fused pallas_call for the whole stack. x: (B, S, D)."""
    B, S, D = x.shape
    inner = N_HEADS * D_KV
    L = N_LAYERS
    mask3 = attention_mask.reshape(B, 1, S).astype(jnp.float32)

    return pl.pallas_call(
        functools.partial(t5_stack_kernel, eps=EPS, n_layers=L,
                          n_heads=N_HEADS, d_kv=D_KV, d_ff=D_FF),
        out_shape=jax.ShapeDtypeStruct((B, S, D), x.dtype),
        grid=(B,),
        in_specs=[
            pl.BlockSpec((1, S, D), lambda b: (b, 0, 0)),          # hidden/residual
            pl.BlockSpec((1, 1, S), lambda b: (b, 0, 0)),          # key mask
            pl.BlockSpec((N_HEADS * S, S), lambda b: (0, 0)),      # rel-pos bias (H*S, S)
            pl.BlockSpec((L, 1, D), lambda b: (0, 0, 0)),          # ln1 gamma
            pl.BlockSpec((L, 1, D), lambda b: (0, 0, 0)),          # ln1 beta
            pl.BlockSpec((L, D, 3 * inner), lambda b: (0, 0, 0)),  # wq|wk|wv
            pl.BlockSpec((L, inner, D), lambda b: (0, 0, 0)),      # wo
            pl.BlockSpec((L, 1, D), lambda b: (0, 0, 0)),          # ln2 gamma
            pl.BlockSpec((L, 1, D), lambda b: (0, 0, 0)),          # ln2 beta
            pl.BlockSpec((L, D, 2 * D_FF), lambda b: (0, 0, 0)),   # wi0|wi1 (lane-dense 128)
            pl.BlockSpec((L, D_FF, D), lambda b: (0, 0, 0)),       # wo_ff
            pl.BlockSpec((1, D), lambda b: (0, 0)),                # final ln gamma
            pl.BlockSpec((1, D), lambda b: (0, 0)),                # final ln beta
        ],
        out_specs=pl.BlockSpec((1, S, D), lambda b: (b, 0, 0)),
        input_output_aliases={0: 0},                               # residual aliased to output
        compiler_params=pltpu.CompilerParams(
            dimension_semantics=("parallel",),                     # 1 batch / TC on v7x
            vmem_limit_bytes=32 * 1024 * 1024),                    # explicit scaling guard
    )(x, mask3, rel_bias_hs,
      stack["ln1_g"], stack["ln1_b"], stack["wqkv"], stack["wo"],
      stack["ln2_g"], stack["ln2_b"], stack["wi01"], stack["wo_ff"],
      final_g.reshape(1, D), final_b.reshape(1, D))


# --------------------- relative position bias (JAX glue) --------------------
def _relative_position_bucket(rel_pos, num_buckets, max_distance):
    # bidirectional (encoder) bucketing, matches HF T5
    rel_buckets = jnp.zeros_like(rel_pos)
    num_buckets //= 2
    rel_buckets += (rel_pos > 0).astype(jnp.int32) * num_buckets
    rel_pos = jnp.abs(rel_pos)
    max_exact = num_buckets // 2
    is_small = rel_pos < max_exact
    safe = jnp.maximum(rel_pos, 1).astype(jnp.float32)
    rel_if_large = max_exact + (
        jnp.log(safe / max_exact)
        / jnp.log(max_distance / max_exact)
        * (num_buckets - max_exact)
    ).astype(jnp.int32)
    rel_if_large = jnp.minimum(rel_if_large, num_buckets - 1)
    rel_buckets += jnp.where(is_small, rel_pos, rel_if_large)
    return rel_buckets


def compute_position_bias(rel_emb_table, seq_len):
    # TODO(synk): bucket+table gather kept in XLA (data-dependent gather; no
    # benefit moving it into Pallas at these shapes).
    ctx = jnp.arange(seq_len)[:, None]
    mem = jnp.arange(seq_len)[None, :]
    buckets = _relative_position_bucket(mem - ctx, NUM_BUCKETS, MAX_DISTANCE)
    bias = rel_emb_table[buckets]                 # (S, S, H)
    bias = jnp.transpose(bias, (2, 0, 1))         # (H, S, S) -- no B broadcast
    return bias.reshape(N_HEADS * seq_len, seq_len)   # (H*S, S) for the kernel


# ------------------------------ full forward ---------------------------------
@jax.jit
def transformer_forward(params, input_ids, attention_mask):
    # TODO(synk): embedding lookup kept as XLA gather.
    x = jnp.take(params["embed"], input_ids, axis=0)           # (B, S, D)
    seq_len = input_ids.shape[1]
    rel_bias_hs = compute_position_bias(params["rel_emb"], seq_len)  # (H*S, S)
    # dropout_rate treated as 0 (inference); no-op.
    return pallas_t5_stack(x, attention_mask, rel_bias_hs, params["stack"],
                           params["final_ln_g"], params["final_ln_b"])


# ------------------------------ param init -----------------------------------
def init_params(key):
    def dense(k, shape, scale=0.02):
        return scale * jax.random.normal(k, shape, dtype=jnp.float32)

    inner = N_HEADS * D_KV
    keys = jax.random.split(key, 2 + 7 * N_LAYERS)
    params = {
        "embed": dense(keys[0], (VOCAB, D_MODEL), 1.0),
        "rel_emb": dense(keys[1], (NUM_BUCKETS, N_HEADS), 1.0),
        "final_ln_g": jnp.ones((D_MODEL,), jnp.float32),
        "final_ln_b": jnp.zeros((D_MODEL,), jnp.float32),
    }
    wqkv_l, wo_l, wi01_l, woff_l = [], [], [], []
    for i in range(N_LAYERS):
        k = keys[2 + 7 * i: 2 + 7 * (i + 1)]
        wq = dense(k[0], (D_MODEL, inner))
        wk = dense(k[1], (D_MODEL, inner))
        wv = dense(k[2], (D_MODEL, inner))
        wqkv_l.append(jnp.concatenate([wq, wk, wv], axis=1))      # (D, 3*inner)
        wo_l.append(dense(k[3], (inner, D_MODEL)))
        wi0 = dense(k[4], (D_MODEL, D_FF))
        wi1 = dense(k[5], (D_MODEL, D_FF))
        wi01_l.append(jnp.concatenate([wi0, wi1], axis=1))        # (D, 2*D_FF)
        woff_l.append(dense(k[6], (D_FF, D_MODEL)))
    params["stack"] = {
        "ln1_g": jnp.ones((N_LAYERS, 1, D_MODEL), jnp.float32),
        "ln1_b": jnp.zeros((N_LAYERS, 1, D_MODEL), jnp.float32),
        "wqkv": jnp.stack(wqkv_l),                                # (L, D, 3*inner)
        "wo": jnp.stack(wo_l),                                    # (L, inner, D)
        "ln2_g": jnp.ones((N_LAYERS, 1, D_MODEL), jnp.float32),
        "ln2_b": jnp.zeros((N_LAYERS, 1, D_MODEL), jnp.float32),
        "wi01": jnp.stack(wi01_l),                                # (L, D, 2*D_FF)
        "wo_ff": jnp.stack(woff_l),                               # (L, D_FF, D)
    }
    return params


# TODO(synk): decoder path (cross-attention + causal mask), use_mup, bf16 MXU
# inputs, and an S-tiled flash-style attention path (needed before scaling to
# real T5 sizes on v7x's 64 MiB VMEM) are not exercised; f32 encoder only.

if __name__ == "__main__":
    key = jax.random.PRNGKey(0)
    pkey, ikey = jax.random.split(key)
    params = init_params(pkey)

    B, S = 2, 8
    input_ids = jax.random.randint(ikey, (B, S), 0, VOCAB, dtype=jnp.int32)
    attention_mask = jnp.ones((B, S), dtype=jnp.float32)

    hidden = transformer_forward(params, input_ids, attention_mask)
    jax.block_until_ready(hidden)
    assert hidden.shape == (B, S, D_MODEL)
    assert bool(jnp.all(jnp.isfinite(hidden)))
    print("KERNEL_OK")
</pallas_src>

<mosaic_0001>
module attributes {stable_mosaic.version = 11 : i64} {
  func.func @t5_stack_kernel(%arg0: i32, %arg1: memref<1x8x32xf32, #tpu.memory_space<vmem>>, %arg2: memref<1x1x8xf32, #tpu.memory_space<vmem>>, %arg3: memref<32x8xf32, #tpu.memory_space<vmem>>, %arg4: memref<2x1x32xf32, #tpu.memory_space<vmem>>, %arg5: memref<2x1x32xf32, #tpu.memory_space<vmem>>, %arg6: memref<2x32x96xf32, #tpu.memory_space<vmem>>, %arg7: memref<2x32x32xf32, #tpu.memory_space<vmem>>, %arg8: memref<2x1x32xf32, #tpu.memory_space<vmem>>, %arg9: memref<2x1x32xf32, #tpu.memory_space<vmem>>, %arg10: memref<2x32x128xf32, #tpu.memory_space<vmem>>, %arg11: memref<2x64x32xf32, #tpu.memory_space<vmem>>, %arg12: memref<1x32xf32, #tpu.memory_space<vmem>>, %arg13: memref<1x32xf32, #tpu.memory_space<vmem>>, %arg14: memref<1x8x32xf32, #tpu.memory_space<vmem>>) attributes {dimension_semantics = [#tpu.dimension_semantics<parallel>], iteration_bounds = array<i64: 2>, scalar_prefetch = 0 : i64, scratch_operands = 0 : i64, tpu.core_type = #tpu.core_type<tc>, window_params = [{transform_indices = @transform_0, window_bounds = array<i64: 1, 8, 32>}, {transform_indices = @transform_1, window_bounds = array<i64: 1, 1, 8>}, {pipeline_mode = #tpu.pipeline_mode<synchronous>, transform_indices = @transform_2, window_bounds = array<i64: 32, 8>}, {pipeline_mode = #tpu.pipeline_mode<synchronous>, transform_indices = @transform_3, window_bounds = array<i64: 2, 1, 32>}, {pipeline_mode = #tpu.pipeline_mode<synchronous>, transform_indices = @transform_4, window_bounds = array<i64: 2, 1, 32>}, {pipeline_mode = #tpu.pipeline_mode<synchronous>, transform_indices = @transform_5, window_bounds = array<i64: 2, 32, 96>}, {pipeline_mode = #tpu.pipeline_mode<synchronous>, transform_indices = @transform_6, window_bounds = array<i64: 2, 32, 32>}, {pipeline_mode = #tpu.pipeline_mode<synchronous>, transform_indices = @transform_7, window_bounds = array<i64: 2, 1, 32>}, {pipeline_mode = #tpu.pipeline_mode<synchronous>, transform_indices = @transform_8, window_bounds = array<i64: 2, 1, 32>}, {pipeline_mode = #tpu.pipeline_mode<synchronous>, transform_indices = @transform_9, window_bounds = array<i64: 2, 32, 128>}, {pipeline_mode = #tpu.pipeline_mode<synchronous>, transform_indices = @transform_10, window_bounds = array<i64: 2, 64, 32>}, {pipeline_mode = #tpu.pipeline_mode<synchronous>, transform_indices = @transform_11, window_bounds = array<i64: 1, 32>}, {pipeline_mode = #tpu.pipeline_mode<synchronous>, transform_indices = @transform_12, window_bounds = array<i64: 1, 32>}, {transform_indices = @transform_13, window_bounds = array<i64: 1, 8, 32>}]} {
    %c0 = arith.constant 0 : index
    %c0_0 = arith.constant 0 : index
    %c0_1 = arith.constant 0 : index
    %0 = vector.load %arg1[%c0, %c0_0, %c0_1] : memref<1x8x32xf32, #tpu.memory_space<vmem>>, vector<1x8x32xf32>
    %1 = vector.shape_cast %0 : vector<1x8x32xf32> to vector<8x32xf32>
    %c0_2 = arith.constant 0 : index
    %c0_3 = arith.constant 0 : index
    %c0_4 = arith.constant 0 : index
    %2 = vector.load %arg2[%c0_2, %c0_3, %c0_4] : memref<1x1x8xf32, #tpu.memory_space<vmem>>, vector<1x1x8xf32>
    %3 = vector.shape_cast %2 : vector<1x1x8xf32> to vector<1x8xf32>
    %cst = arith.constant 1.000000e+00 : f32
    %4 = vector.broadcast %cst : f32 to vector<1x8xf32>
    %5 = arith.subf %4, %3 : vector<1x8xf32>
    %cst_5 = arith.constant -1.000000e+09 : f32
    %6 = vector.broadcast %cst_5 : f32 to vector<1x8xf32>
    %7 = arith.mulf %5, %6 : vector<1x8xf32>
    %c0_6 = arith.constant 0 : index
    %c0_7 = arith.constant 0 : index
    %8 = vector.load %arg3[%c0_6, %c0_7] : memref<32x8xf32, #tpu.memory_space<vmem>>, vector<32x8xf32>
    %c0_8 = arith.constant 0 : index
    %c0_9 = arith.constant 0 : index
    %c0_10 = arith.constant 0 : index
    %9 = vector.load %arg4[%c0_8, %c0_9, %c0_10] : memref<2x1x32xf32, #tpu.memory_space<vmem>>, vector<1x1x32xf32>
    %10 = vector.shape_cast %9 : vector<1x1x32xf32> to vector<1x32xf32>
    %c0_11 = arith.constant 0 : index
    %c0_12 = arith.constant 0 : index
    %c0_13 = arith.constant 0 : index
    %11 = vector.load %arg5[%c0_11, %c0_12, %c0_13] : memref<2x1x32xf32, #tpu.memory_space<vmem>>, vector<1x1x32xf32>
    %12 = vector.shape_cast %11 : vector<1x1x32xf32> to vector<1x32xf32>
    %cst_14 = arith.constant dense<0.000000e+00> : vector<8xf32>
    %13 = vector.multi_reduction <add>, %1, %cst_14 [1] : vector<8x32xf32> to vector<8xf32>
    %14 = vector.shape_cast %13 : vector<8xf32> to vector<8x1xf32>
    %cst_15 = arith.constant 3.200000e+01 : f32
    %15 = vector.broadcast %cst_15 : f32 to vector<8x1xf32>
    %16 = arith.divf %14, %15 : vector<8x1xf32>
    %17 = vector.broadcast %16 : vector<8x1xf32> to vector<8x32xf32>
    %18 = arith.subf %1, %17 : vector<8x32xf32>
    %19 = arith.mulf %18, %18 : vector<8x32xf32>
    %cst_16 = arith.constant dense<0.000000e+00> : vector<8xf32>
    %20 = vector.multi_reduction <add>, %19, %cst_16 [1] : vector<8x32xf32> to vector<8xf32>
    %21 = vector.shape_cast %20 : vector<8xf32> to vector<8x1xf32>
    %cst_17 = arith.constant 3.200000e+01 : f32
    %22 = vector.broadcast %cst_17 : f32 to vector<8x1xf32>
    %23 = arith.divf %21, %22 : vector<8x1xf32>
    %24 = vector.broadcast %16 : vector<8x1xf32> to vector<8x32xf32>
    %25 = arith.subf %1, %24 : vector<8x32xf32>
    %cst_18 = arith.constant 9.99999997E-7 : f32
    %26 = vector.broadcast %cst_18 : f32 to vector<8x1xf32>
    %27 = arith.addf %23, %26 : vector<8x1xf32>
    %28 = math.rsqrt %27 : vector<8x1xf32>
    %29 = vector.broadcast %28 : vector<8x1xf32> to vector<8x32xf32>
    %30 = arith.mulf %25, %29 : vector<8x32xf32>
    %31 = vector.broadcast %10 : vector<1x32xf32> to vector<8x32xf32>
    %32 = arith.mulf %30, %31 : vector<8x32xf32>
    %33 = vector.broadcast %12 : vector<1x32xf32> to vector<8x32xf32>
    %34 = arith.addf %32, %33 : vector<8x32xf32>
    %c0_19 = arith.constant 0 : index
    %c0_20 = arith.constant 0 : index
    %c0_21 = arith.constant 0 : index
    %35 = vector.load %arg6[%c0_19, %c0_20, %c0_21] : memref<2x32x96xf32, #tpu.memory_space<vmem>>, vector<1x32x96xf32>
    %36 = vector.shape_cast %35 : vector<1x32x96xf32> to vector<32x96xf32>
    %cst_22 = arith.constant dense<0.000000e+00> : vector<8x96xf32>
    %37 = tpu.matmul %34, %36, %cst_22 {dimension_numbers = #tpu.dot_dimension_numbers<[1], [0], [0], [1], [0, 0, 1, 1], [], []>} : vector<8x32xf32>, vector<32x96xf32>, vector<8x96xf32> -> vector<8x96xf32>
    %38 = vector.extract_strided_slice %37 {offsets = [0, 0], sizes = [8, 8], strides = [1, 1]} : vector<8x96xf32> to vector<8x8xf32>
    %39 = vector.extract_strided_slice %37 {offsets = [0, 32], sizes = [8, 8], strides = [1, 1]} : vector<8x96xf32> to vector<8x8xf32>
    %40 = tpu.transpose %39, [1, 0] : vector<8x8xf32> -> vector<8x8xf32>
    %cst_23 = arith.constant dense<0.000000e+00> : vector<8x8xf32>
    %41 = tpu.matmul %38, %40, %cst_23 {dimension_numbers = #tpu.dot_dimension_numbers<[1], [0], [0], [1], [0, 0, 1, 1], [], []>} : vector<8x8xf32>, vector<8x8xf32>, vector<8x8xf32> -> vector<8x8xf32>
    %42 = vector.extract_strided_slice %37 {offsets = [0, 8], sizes = [8, 8], strides = [1, 1]} : vector<8x96xf32> to vector<8x8xf32>
    %43 = vector.extract_strided_slice %37 {offsets = [0, 40], sizes = [8, 8], strides = [1, 1]} : vector<8x96xf32> to vector<8x8xf32>
    %44 = tpu.transpose %43, [1, 0] : vector<8x8xf32> -> vector<8x8xf32>
    %cst_24 = arith.constant dense<0.000000e+00> : vector<8x8xf32>
    %45 = tpu.matmul %42, %44, %cst_24 {dimension_numbers = #tpu.dot_dimension_numbers<[1], [0], [0], [1], [0, 0, 1, 1], [], []>} : vector<8x8xf32>, vector<8x8xf32>, vector<8x8xf32> -> vector<8x8xf32>
    %46 = vector.extract_strided_slice %37 {offsets = [0, 16], sizes = [8, 8], strides = [1, 1]} : vector<8x96xf32> to vector<8x8xf32>
    %47 = vector.extract_strided_slice %37 {offsets = [0, 48], sizes = [8, 8], strides = [1, 1]} : vector<8x96xf32> to vector<8x8xf32>
    %48 = tpu.transpose %47, [1, 0] : vector<8x8xf32> -> vector<8x8xf32>
    %cst_25 = arith.constant dense<0.000000e+00> : vector<8x8xf32>
    %49 = tpu.matmul %46, %48, %cst_25 {dimension_numbers = #tpu.dot_dimension_numbers<[1], [0], [0], [1], [0, 0, 1, 1], [], []>} : vector<8x8xf32>, vector<8x8xf32>, vector<8x8xf32> -> vector<8x8xf32>
    %50 = vector.extract_strided_slice %37 {offsets = [0, 24], sizes = [8, 8], strides = [1, 1]} : vector<8x96xf32> to vector<8x8xf32>
    %51 = vector.extract_strided_slice %37 {offsets = [0, 56], sizes = [8, 8], strides = [1, 1]} : vector<8x96xf32> to vector<8x8xf32>
    %52 = tpu.transpose %51, [1, 0] : vector<8x8xf32> -> vector<8x8xf32>
    %cst_26 = arith.constant dense<0.000000e+00> : vector<8x8xf32>
    %53 = tpu.matmul %50, %52, %cst_26 {dimension_numbers = #tpu.dot_dimension_numbers<[1], [0], [0], [1], [0, 0, 1, 1], [], []>} : vector<8x8xf32>, vector<8x8xf32>, vector<8x8xf32> -> vector<8x8xf32>
    %54 = tpu.concatenate %41, %45, %49, %53 in 0 : vector<8x8xf32>, vector<8x8xf32>, vector<8x8xf32>, vector<8x8xf32> -> vector<32x8xf32>
    %55 = arith.addf %54, %8 : vector<32x8xf32>
    %56 = vector.broadcast %7 : vector<1x8xf32> to vector<32x8xf32>
    %57 = arith.addf %55, %56 : vector<32x8xf32>
    %cst_27 = arith.constant dense<0xFF800000> : vector<32xf32>
    %58 = vector.multi_reduction <maximumf>, %57, %cst_27 [1] : vector<32x8xf32> to vector<32xf32>
    %59 = vector.shape_cast %58 : vector<32xf32> to vector<32x1xf32>
    %60 = vector.broadcast %59 : vector<32x1xf32> to vector<32x8xf32>
    %61 = arith.subf %57, %60 : vector<32x8xf32>
    %62 = math.exp %61 : vector<32x8xf32>
    %cst_28 = arith.constant dense<0.000000e+00> : vector<32xf32>
    %63 = vector.multi_reduction <add>, %62, %cst_28 [1] : vector<32x8xf32> to vector<32xf32>
    %64 = vector.shape_cast %63 : vector<32xf32> to vector<32x1xf32>
    %65 = tpu.reciprocal %64 {approx = true} : vector<32x1xf32> -> vector<32x1xf32>
    %66 = vector.broadcast %65 : vector<32x1xf32> to vector<32x8xf32>
    %67 = arith.mulf %62, %66 : vector<32x8xf32>
    %c0_29 = arith.constant 0 : index
    %c0_30 = arith.constant 0 : index
    %c0_31 = arith.constant 0 : index
    %68 = vector.load %arg7[%c0_29, %c0_30, %c0_31] : memref<2x32x32xf32, #tpu.memory_space<vmem>>, vector<1x32x32xf32>
    %69 = vector.shape_cast %68 : vector<1x32x32xf32> to vector<32x32xf32>
    %70 = vector.extract_strided_slice %67 {offsets = [0, 0], sizes = [8, 8], strides = [1, 1]} : vector<32x8xf32> to vector<8x8xf32>
    %71 = vector.extract_strided_slice %37 {offsets = [0, 64], sizes = [8, 8], strides = [1, 1]} : vector<8x96xf32> to vector<8x8xf32>
    %cst_32 = arith.constant dense<0.000000e+00> : vector<8x8xf32>
    %72 = tpu.matmul %70, %71, %cst_32 {dimension_numbers = #tpu.dot_dimension_numbers<[1], [0], [0], [1], [0, 0, 1, 1], [], []>} : vector<8x8xf32>, vector<8x8xf32>, vector<8x8xf32> -> vector<8x8xf32>
    %73 = vector.extract_strided_slice %69 {offsets = [0, 0], sizes = [8, 32], strides = [1, 1]} : vector<32x32xf32> to vector<8x32xf32>
    %cst_33 = arith.constant dense<0.000000e+00> : vector<8x32xf32>
    %74 = tpu.matmul %72, %73, %cst_33 {dimension_numbers = #tpu.dot_dimension_numbers<[1], [0], [0], [1], [0, 0, 1, 1], [], []>} : vector<8x8xf32>, vector<8x32xf32>, vector<8x32xf32> -> vector<8x32xf32>
    %75 = arith.addf %1, %74 : vector<8x32xf32>
    %76 = vector.extract_strided_slice %67 {offsets = [8, 0], sizes = [8, 8], strides = [1, 1]} : vector<32x8xf32> to vector<8x8xf32>
    %77 = vector.extract_strided_slice %37 {offsets = [0, 72], sizes = [8, 8], strides = [1, 1]} : vector<8x96xf32> to vector<8x8xf32>
    %cst_34 = arith.constant dense<0.000000e+00> : vector<8x8xf32>
    %78 = tpu.matmul %76, %77, %cst_34 {dimension_numbers = #tpu.dot_dimension_numbers<[1], [0], [0], [1], [0, 0, 1, 1], [], []>} : vector<8x8xf32>, vector<8x8xf32>, vector<8x8xf32> -> vector<8x8xf32>
    %79 = vector.extract_strided_slice %69 {offsets = [8, 0], sizes = [8, 32], strides = [1, 1]} : vector<32x32xf32> to vector<8x32xf32>
    %cst_35 = arith.constant dense<0.000000e+00> : vector<8x32xf32>
    %80 = tpu.matmul %78, %79, %cst_35 {dimension_numbers = #tpu.dot_dimension_numbers<[1], [0], [0], [1], [0, 0, 1, 1], [], []>} : vector<8x8xf32>, vector<8x32xf32>, vector<8x32xf32> -> vector<8x32xf32>
    %81 = arith.addf %75, %80 : vector<8x32xf32>
    %82 = vector.extract_strided_slice %67 {offsets = [16, 0], sizes = [8, 8], strides = [1, 1]} : vector<32x8xf32> to vector<8x8xf32>
    %83 = vector.extract_strided_slice %37 {offsets = [0, 80], sizes = [8, 8], strides = [1, 1]} : vector<8x96xf32> to vector<8x8xf32>
    %cst_36 = arith.constant dense<0.000000e+00> : vector<8x8xf32>
    %84 = tpu.matmul %82, %83, %cst_36 {dimension_numbers = #tpu.dot_dimension_numbers<[1], [0], [0], [1], [0, 0, 1, 1], [], []>} : vector<8x8xf32>, vector<8x8xf32>, vector<8x8xf32> -> vector<8x8xf32>
    %85 = vector.extract_strided_slice %69 {offsets = [16, 0], sizes = [8, 32], strides = [1, 1]} : vector<32x32xf32> to vector<8x32xf32>
    %cst_37 = arith.constant dense<0.000000e+00> : vector<8x32xf32>
    %86 = tpu.matmul %84, %85, %cst_37 {dimension_numbers = #tpu.dot_dimension_numbers<[1], [0], [0], [1], [0, 0, 1, 1], [], []>} : vector<8x8xf32>, vector<8x32xf32>, vector<8x32xf32> -> vector<8x32xf32>
    %87 = arith.addf %81, %86 : vector<8x32xf32>
    %88 = vector.extract_strided_slice %67 {offsets = [24, 0], sizes = [8, 8], strides = [1, 1]} : vector<32x8xf32> to vector<8x8xf32>
    %89 = vector.extract_strided_slice %37 {offsets = [0, 88], sizes = [8, 8], strides = [1, 1]} : vector<8x96xf32> to vector<8x8xf32>
    %cst_38 = arith.constant dense<0.000000e+00> : vector<8x8xf32>
    %90 = tpu.matmul %88, %89, %cst_38 {dimension_numbers = #tpu.dot_dimension_numbers<[1], [0], [0], [1], [0, 0, 1, 1], [], []>} : vector<8x8xf32>, vector<8x8xf32>, vector<8x8xf32> -> vector<8x8xf32>
    %91 = vector.extract_strided_slice %69 {offsets = [24, 0], sizes = [8, 32], strides = [1, 1]} : vector<32x32xf32> to vector<8x32xf32>
    %cst_39 = arith.constant dense<0.000000e+00> : vector<8x32xf32>
    %92 = tpu.matmul %90, %91, %cst_39 {dimension_numbers = #tpu.dot_dimension_numbers<[1], [0], [0], [1], [0, 0, 1, 1], [], []>} : vector<8x8xf32>, vector<8x32xf32>, vector<8x32xf32> -> vector<8x32xf32>
    %93 = arith.addf %87, %92 : vector<8x32xf32>
    %c0_40 = arith.constant 0 : index
    %c0_41 = arith.constant 0 : index
    %c0_42 = arith.constant 0 : index
    %94 = vector.load %arg8[%c0_40, %c0_41, %c0_42] : memref<2x1x32xf32, #tpu.memory_space<vmem>>, vector<1x1x32xf32>
    %95 = vector.shape_cast %94 : vector<1x1x32xf32> to vector<1x32xf32>
    %c0_43 = arith.constant 0 : index
    %c0_44 = arith.constant 0 : index
    %c0_45 = arith.constant 0 : index
    %96 = vector.load %arg9[%c0_43, %c0_44, %c0_45] : memref<2x1x32xf32, #tpu.memory_space<vmem>>, vector<1x1x32xf32>
    %97 = vector.shape_cast %96 : vector<1x1x32xf32> to vector<1x32xf32>
    %cst_46 = arith.constant dense<0.000000e+00> : vector<8xf32>
    %98 = vector.multi_reduction <add>, %93, %cst_46 [1] : vector<8x32xf32> to vector<8xf32>
    %99 = vector.shape_cast %98 : vector<8xf32> to vector<8x1xf32>
    %cst_47 = arith.constant 3.200000e+01 : f32
    %100 = vector.broadcast %cst_47 : f32 to vector<8x1xf32>
    %101 = arith.divf %99, %100 : vector<8x1xf32>
    %102 = vector.broadcast %101 : vector<8x1xf32> to vector<8x32xf32>
    %103 = arith.subf %93, %102 : vector<8x32xf32>
    %104 = arith.mulf %103, %103 : vector<8x32xf32>
    %cst_48 = arith.constant dense<0.000000e+00> : vector<8xf32>
    %105 = vector.multi_reduction <add>, %104, %cst_48 [1] : vector<8x32xf32> to vector<8xf32>
    %106 = vector.shape_cast %105 : vector<8xf32> to vector<8x1xf32>
    %cst_49 = arith.constant 3.200000e+01 : f32
    %107 = vector.broadcast %cst_49 : f32 to vector<8x1xf32>
    %108 = arith.divf %106, %107 : vector<8x1xf32>
    %109 = vector.broadcast %101 : vector<8x1xf32> to vector<8x32xf32>
    %110 = arith.subf %93, %109 : vector<8x32xf32>
    %cst_50 = arith.constant 9.99999997E-7 : f32
    %111 = vector.broadcast %cst_50 : f32 to vector<8x1xf32>
    %112 = arith.addf %108, %111 : vector<8x1xf32>
    %113 = math.rsqrt %112 : vector<8x1xf32>
    %114 = vector.broadcast %113 : vector<8x1xf32> to vector<8x32xf32>
    %115 = arith.mulf %110, %114 : vector<8x32xf32>
    %116 = vector.broadcast %95 : vector<1x32xf32> to vector<8x32xf32>
    %117 = arith.mulf %115, %116 : vector<8x32xf32>
    %118 = vector.broadcast %97 : vector<1x32xf32> to vector<8x32xf32>
    %119 = arith.addf %117, %118 : vector<8x32xf32>
    %c0_51 = arith.constant 0 : index
    %c0_52 = arith.constant 0 : index
    %c0_53 = arith.constant 0 : index
    %120 = vector.load %arg10[%c0_51, %c0_52, %c0_53] : memref<2x32x128xf32, #tpu.memory_space<vmem>>, vector<1x32x128xf32>
    %121 = vector.shape_cast %120 : vector<1x32x128xf32> to vector<32x128xf32>
    %cst_54 = arith.constant dense<0.000000e+00> : vector<8x128xf32>
    %122 = tpu.matmul %119, %121, %cst_54 {dimension_numbers = #tpu.dot_dimension_numbers<[1], [0], [0], [1], [0, 0, 1, 1], [], []>} : vector<8x32xf32>, vector<32x128xf32>, vector<8x128xf32> -> vector<8x128xf32>
    %123 = vector.extract_strided_slice %122 {offsets = [0, 0], sizes = [8, 64], strides = [1, 1]} : vector<8x128xf32> to vector<8x64xf32>
    %124 = arith.mulf %123, %123 : vector<8x64xf32>
    %125 = arith.mulf %123, %124 : vector<8x64xf32>
    %cst_55 = arith.constant 4.471500e-02 : f32
    %126 = vector.broadcast %cst_55 : f32 to vector<8x64xf32>
    %127 = arith.mulf %126, %125 : vector<8x64xf32>
    %128 = arith.addf %123, %127 : vector<8x64xf32>
    %cst_56 = arith.constant 0.797884583 : f32
    %129 = vector.broadcast %cst_56 : f32 to vector<8x64xf32>
    %130 = arith.mulf %129, %128 : vector<8x64xf32>
    %131 = math.tanh %130 : vector<8x64xf32>
    %cst_57 = arith.constant 1.000000e+00 : f32
    %132 = vector.broadcast %cst_57 : f32 to vector<8x64xf32>
    %133 = arith.addf %132, %131 : vector<8x64xf32>
    %cst_58 = arith.constant 5.000000e-01 : f32
    %134 = vector.broadcast %cst_58 : f32 to vector<8x64xf32>
    %135 = arith.mulf %134, %133 : vector<8x64xf32>
    %136 = arith.mulf %123, %135 : vector<8x64xf32>
    %137 = vector.extract_strided_slice %122 {offsets = [0, 64], sizes = [8, 64], strides = [1, 1]} : vector<8x128xf32> to vector<8x64xf32>
    %138 = arith.mulf %136, %137 : vector<8x64xf32>
    %c0_59 = arith.constant 0 : index
    %c0_60 = arith.constant 0 : index
    %c0_61 = arith.constant 0 : index
    %139 = vector.load %arg11[%c0_59, %c0_60, %c0_61] : memref<2x64x32xf32, #tpu.memory_space<vmem>>, vector<1x64x32xf32>
    %140 = vector.shape_cast %139 : vector<1x64x32xf32> to vector<64x32xf32>
    %cst_62 = arith.constant dense<0.000000e+00> : vector<8x32xf32>
    %141 = tpu.matmul %138, %140, %cst_62 {dimension_numbers = #tpu.dot_dimension_numbers<[1], [0], [0], [1], [0, 0, 1, 1], [], []>} : vector<8x64xf32>, vector<64x32xf32>, vector<8x32xf32> -> vector<8x32xf32>
    %142 = arith.addf %93, %141 : vector<8x32xf32>
    %c1 = arith.constant 1 : index
    %c0_63 = arith.constant 0 : index
    %c0_64 = arith.constant 0 : index
    %143 = vector.load %arg4[%c1, %c0_63, %c0_64] : memref<2x1x32xf32, #tpu.memory_space<vmem>>, vector<1x1x32xf32>
    %144 = vector.shape_cast %143 : vector<1x1x32xf32> to vector<1x32xf32>
    %c1_65 = arith.constant 1 : index
    %c0_66 = arith.constant 0 : index
    %c0_67 = arith.constant 0 : index
    %145 = vector.load %arg5[%c1_65, %c0_66, %c0_67] : memref<2x1x32xf32, #tpu.memory_space<vmem>>, vector<1x1x32xf32>
    %146 = vector.shape_cast %145 : vector<1x1x32xf32> to vector<1x32xf32>
    %cst_68 = arith.constant dense<0.000000e+00> : vector<8xf32>
    %147 = vector.multi_reduction <add>, %142, %cst_68 [1] : vector<8x32xf32> to vector<8xf32>
    %148 = vector.shape_cast %147 : vector<8xf32> to vector<8x1xf32>
    %cst_69 = arith.constant 3.200000e+01 : f32
    %149 = vector.broadcast %cst_69 : f32 to vector<8x1xf32>
    %150 = arith.divf %148, %149 : vector<8x1xf32>
    %151 = vector.broadcast %150 : vector<8x1xf32> to vector<8x32xf32>
    %152 = arith.subf %142, %151 : vector<8x32xf32>
    %153 = arith.mulf %152, %152 : vector<8x32xf32>
    %cst_70 = arith.constant dense<0.000000e+00> : vector<8xf32>
    %154 = vector.multi_reduction <add>, %153, %cst_70 [1] : vector<8x32xf32> to vector<8xf32>
    %155 = vector.shape_cast %154 : vector<8xf32> to vector<8x1xf32>
    %cst_71 = arith.constant 3.200000e+01 : f32
    %156 = vector.broadcast %cst_71 : f32 to vector<8x1xf32>
    %157 = arith.divf %155, %156 : vector<8x1xf32>
    %158 = vector.broadcast %150 : vector<8x1xf32> to vector<8x32xf32>
    %159 = arith.subf %142, %158 : vector<8x32xf32>
    %cst_72 = arith.constant 9.99999997E-7 : f32
    %160 = vector.broadcast %cst_72 : f32 to vector<8x1xf32>
    %161 = arith.addf %157, %160 : vector<8x1xf32>
    %162 = math.rsqrt %161 : vector<8x1xf32>
    %163 = vector.broadcast %162 : vector<8x1xf32> to vector<8x32xf32>
    %164 = arith.mulf %159, %163 : vector<8x32xf32>
    %165 = vector.broadcast %144 : vector<1x32xf32> to vector<8x32xf32>
    %166 = arith.mulf %164, %165 : vector<8x32xf32>
    %167 = vector.broadcast %146 : vector<1x32xf32> to vector<8x32xf32>
    %168 = arith.addf %166, %167 : vector<8x32xf32>
    %c1_73 = arith.constant 1 : index
    %c0_74 = arith.constant 0 : index
    %c0_75 = arith.constant 0 : index
    %169 = vector.load %arg6[%c1_73, %c0_74, %c0_75] : memref<2x32x96xf32, #tpu.memory_space<vmem>>, vector<1x32x96xf32>
    %170 = vector.shape_cast %169 : vector<1x32x96xf32> to vector<32x96xf32>
    %cst_76 = arith.constant dense<0.000000e+00> : vector<8x96xf32>
    %171 = tpu.matmul %168, %170, %cst_76 {dimension_numbers = #tpu.dot_dimension_numbers<[1], [0], [0], [1], [0, 0, 1, 1], [], []>} : vector<8x32xf32>, vector<32x96xf32>, vector<8x96xf32> -> vector<8x96xf32>
    %172 = vector.extract_strided_slice %171 {offsets = [0, 0], sizes = [8, 8], strides = [1, 1]} : vector<8x96xf32> to vector<8x8xf32>
    %173 = vector.extract_strided_slice %171 {offsets = [0, 32], sizes = [8, 8], strides = [1, 1]} : vector<8x96xf32> to vector<8x8xf32>
    %174 = tpu.transpose %173, [1, 0] : vector<8x8xf32> -> vector<8x8xf32>
    %cst_77 = arith.constant dense<0.000000e+00> : vector<8x8xf32>
    %175 = tpu.matmul %172, %174, %cst_77 {dimension_numbers = #tpu.dot_dimension_numbers<[1], [0], [0], [1], [0, 0, 1, 1], [], []>} : vector<8x8xf32>, vector<8x8xf32>, vector<8x8xf32> -> vector<8x8xf32>
    %176 = vector.extract_strided_slice %171 {offsets = [0, 8], sizes = [8, 8], strides = [1, 1]} : vector<8x96xf32> to vector<8x8xf32>
    %177 = vector.extract_strided_slice %171 {offsets = [0, 40], sizes = [8, 8], strides = [1, 1]} : vector<8x96xf32> to vector<8x8xf32>
    %178 = tpu.transpose %177, [1, 0] : vector<8x8xf32> -> vector<8x8xf32>
    %cst_78 = arith.constant dense<0.000000e+00> : vector<8x8xf32>
    %179 = tpu.matmul %176, %178, %cst_78 {dimension_numbers = #tpu.dot_dimension_numbers<[1], [0], [0], [1], [0, 0, 1, 1], [], []>} : vector<8x8xf32>, vector<8x8xf32>, vector<8x8xf32> -> vector<8x8xf32>
    %180 = vector.extract_strided_slice %171 {offsets = [0, 16], sizes = [8, 8], strides = [1, 1]} : vector<8x96xf32> to vector<8x8xf32>
    %181 = vector.extract_strided_slice %171 {offsets = [0, 48], sizes = [8, 8], strides = [1, 1]} : vector<8x96xf32> to vector<8x8xf32>
    %182 = tpu.transpose %181, [1, 0] : vector<8x8xf32> -> vector<8x8xf32>
    %cst_79 = arith.constant dense<0.000000e+00> : vector<8x8xf32>
    %183 = tpu.matmul %180, %182, %cst_79 {dimension_numbers = #tpu.dot_dimension_numbers<[1], [0], [0], [1], [0, 0, 1, 1], [], []>} : vector<8x8xf32>, vector<8x8xf32>, vector<8x8xf32> -> vector<8x8xf32>
    %184 = vector.extract_strided_slice %171 {offsets = [0, 24], sizes = [8, 8], strides = [1, 1]} : vector<8x96xf32> to vector<8x8xf32>
    %185 = vector.extract_strided_slice %171 {offsets = [0, 56], sizes = [8, 8], strides = [1, 1]} : vector<8x96xf32> to vector<8x8xf32>
    %186 = tpu.transpose %185, [1, 0] : vector<8x8xf32> -> vector<8x8xf32>
    %cst_80 = arith.constant dense<0.000000e+00> : vector<8x8xf32>
    %187 = tpu.matmul %184, %186, %cst_80 {dimension_numbers = #tpu.dot_dimension_numbers<[1], [0], [0], [1], [0, 0, 1, 1], [], []>} : vector<8x8xf32>, vector<8x8xf32>, vector<8x8xf32> -> vector<8x8xf32>
    %188 = tpu.concatenate %175, %179, %183, %187 in 0 : vector<8x8xf32>, vector<8x8xf32>, vector<8x8xf32>, vector<8x8xf32> -> vector<32x8xf32>
    %189 = arith.addf %188, %8 : vector<32x8xf32>
    %190 = vector.broadcast %7 : vector<1x8xf32> to vector<32x8xf32>
    %191 = arith.addf %189, %190 : vector<32x8xf32>
    %cst_81 = arith.constant dense<0xFF800000> : vector<32xf32>
    %192 = vector.multi_reduction <maximumf>, %191, %cst_81 [1] : vector<32x8xf32> to vector<32xf32>
    %193 = vector.shape_cast %192 : vector<32xf32> to vector<32x1xf32>
    %194 = vector.broadcast %193 : vector<32x1xf32> to vector<32x8xf32>
    %195 = arith.subf %191, %194 : vector<32x8xf32>
    %196 = math.exp %195 : vector<32x8xf32>
    %cst_82 = arith.constant dense<0.000000e+00> : vector<32xf32>
    %197 = vector.multi_reduction <add>, %196, %cst_82 [1] : vector<32x8xf32> to vector<32xf32>
    %198 = vector.shape_cast %197 : vector<32xf32> to vector<32x1xf32>
    %199 = tpu.reciprocal %198 {approx = true} : vector<32x1xf32> -> vector<32x1xf32>
    %200 = vector.broadcast %199 : vector<32x1xf32> to vector<32x8xf32>
    %201 = arith.mulf %196, %200 : vector<32x8xf32>
    %c1_83 = arith.constant 1 : index
    %c0_84 = arith.constant 0 : index
    %c0_85 = arith.constant 0 : index
    %202 = vector.load %arg7[%c1_83, %c0_84, %c0_85] : memref<2x32x32xf32, #tpu.memory_space<vmem>>, vector<1x32x32xf32>
    %203 = vector.shape_cast %202 : vector<1x32x32xf32> to vector<32x32xf32>
    %204 = vector.extract_strided_slice %201 {offsets = [0, 0], sizes = [8, 8], strides = [1, 1]} : vector<32x8xf32> to vector<8x8xf32>
    %205 = vector.extract_strided_slice %171 {offsets = [0, 64], sizes = [8, 8], strides = [1, 1]} : vector<8x96xf32> to vector<8x8xf32>
    %cst_86 = arith.constant dense<0.000000e+00> : vector<8x8xf32>
    %206 = tpu.matmul %204, %205, %cst_86 {dimension_numbers = #tpu.dot_dimension_numbers<[1], [0], [0], [1], [0, 0, 1, 1], [], []>} : vector<8x8xf32>, vector<8x8xf32>, vector<8x8xf32> -> vector<8x8xf32>
    %207 = vector.extract_strided_slice %203 {offsets = [0, 0], sizes = [8, 32], strides = [1, 1]} : vector<32x32xf32> to vector<8x32xf32>
    %cst_87 = arith.constant dense<0.000000e+00> : vector<8x32xf32>
    %208 = tpu.matmul %206, %207, %cst_87 {dimension_numbers = #tpu.dot_dimension_numbers<[1], [0], [0], [1], [0, 0, 1, 1], [], []>} : vector<8x8xf32>, vector<8x32xf32>, vector<8x32xf32> -> vector<8x32xf32>
    %209 = arith.addf %142, %208 : vector<8x32xf32>
    %210 = vector.extract_strided_slice %201 {offsets = [8, 0], sizes = [8, 8], strides = [1, 1]} : vector<32x8xf32> to vector<8x8xf32>
    %211 = vector.extract_strided_slice %171 {offsets = [0, 72], sizes = [8, 8], strides = [1, 1]} : vector<8x96xf32> to vector<8x8xf32>
    %cst_88 = arith.constant dense<0.000000e+00> : vector<8x8xf32>
    %212 = tpu.matmul %210, %211, %cst_88 {dimension_numbers = #tpu.dot_dimension_numbers<[1], [0], [0], [1], [0, 0, 1, 1], [], []>} : vector<8x8xf32>, vector<8x8xf32>, vector<8x8xf32> -> vector<8x8xf32>
    %213 = vector.extract_strided_slice %203 {offsets = [8, 0], sizes = [8, 32], strides = [1, 1]} : vector<32x32xf32> to vector<8x32xf32>
    %cst_89 = arith.constant dense<0.000000e+00> : vector<8x32xf32>
    %214 = tpu.matmul %212, %213, %cst_89 {dimension_numbers = #tpu.dot_dimension_numbers<[1], [0], [0], [1], [0, 0, 1, 1], [], []>} : vector<8x8xf32>, vector<8x32xf32>, vector<8x32xf32> -> vector<8x32xf32>
    %215 = arith.addf %209, %214 : vector<8x32xf32>
    %216 = vector.extract_strided_slice %201 {offsets = [16, 0], sizes = [8, 8], strides = [1, 1]} : vector<32x8xf32> to vector<8x8xf32>
    %217 = vector.extract_strided_slice %171 {offsets = [0, 80], sizes = [8, 8], strides = [1, 1]} : vector<8x96xf32> to vector<8x8xf32>
    %cst_90 = arith.constant dense<0.000000e+00> : vector<8x8xf32>
    %218 = tpu.matmul %216, %217, %cst_90 {dimension_numbers = #tpu.dot_dimension_numbers<[1], [0], [0], [1], [0, 0, 1, 1], [], []>} : vector<8x8xf32>, vector<8x8xf32>, vector<8x8xf32> -> vector<8x8xf32>
    %219 = vector.extract_strided_slice %203 {offsets = [16, 0], sizes = [8, 32], strides = [1, 1]} : vector<32x32xf32> to vector<8x32xf32>
    %cst_91 = arith.constant dense<0.000000e+00> : vector<8x32xf32>
    %220 = tpu.matmul %218, %219, %cst_91 {dimension_numbers = #tpu.dot_dimension_numbers<[1], [0], [0], [1], [0, 0, 1, 1], [], []>} : vector<8x8xf32>, vector<8x32xf32>, vector<8x32xf32> -> vector<8x32xf32>
    %221 = arith.addf %215, %220 : vector<8x32xf32>
    %222 = vector.extract_strided_slice %201 {offsets = [24, 0], sizes = [8, 8], strides = [1, 1]} : vector<32x8xf32> to vector<8x8xf32>
    %223 = vector.extract_strided_slice %171 {offsets = [0, 88], sizes = [8, 8], strides = [1, 1]} : vector<8x96xf32> to vector<8x8xf32>
    %cst_92 = arith.constant dense<0.000000e+00> : vector<8x8xf32>
    %224 = tpu.matmul %222, %223, %cst_92 {dimension_numbers = #tpu.dot_dimension_numbers<[1], [0], [0], [1], [0, 0, 1, 1], [], []>} : vector<8x8xf32>, vector<8x8xf32>, vector<8x8xf32> -> vector<8x8xf32>
    %225 = vector.extract_strided_slice %203 {offsets = [24, 0], sizes = [8, 32], strides = [1, 1]} : vector<32x32xf32> to vector<8x32xf32>
    %cst_93 = arith.constant dense<0.000000e+00> : vector<8x32xf32>
    %226 = tpu.matmul %224, %225, %cst_93 {dimension_numbers = #tpu.dot_dimension_numbers<[1], [0], [0], [1], [0, 0, 1, 1], [], []>} : vector<8x8xf32>, vector<8x32xf32>, vector<8x32xf32> -> vector<8x32xf32>
    %227 = arith.addf %221, %226 : vector<8x32xf32>
    %c1_94 = arith.constant 1 : index
    %c0_95 = arith.constant 0 : index
    %c0_96 = arith.constant 0 : index
    %228 = vector.load %arg8[%c1_94, %c0_95, %c0_96] : memref<2x1x32xf32, #tpu.memory_space<vmem>>, vector<1x1x32xf32>
    %229 = vector.shape_cast %228 : vector<1x1x32xf32> to vector<1x32xf32>
    %c1_97 = arith.constant 1 : index
    %c0_98 = arith.constant 0 : index
    %c0_99 = arith.constant 0 : index
    %230 = vector.load %arg9[%c1_97, %c0_98, %c0_99] : memref<2x1x32xf32, #tpu.memory_space<vmem>>, vector<1x1x32xf32>
    %231 = vector.shape_cast %230 : vector<1x1x32xf32> to vector<1x32xf32>
    %cst_100 = arith.constant dense<0.000000e+00> : vector<8xf32>
    %232 = vector.multi_reduction <add>, %227, %cst_100 [1] : vector<8x32xf32> to vector<8xf32>
    %233 = vector.shape_cast %232 : vector<8xf32> to vector<8x1xf32>
    %cst_101 = arith.constant 3.200000e+01 : f32
    %234 = vector.broadcast %cst_101 : f32 to vector<8x1xf32>
    %235 = arith.divf %233, %234 : vector<8x1xf32>
    %236 = vector.broadcast %235 : vector<8x1xf32> to vector<8x32xf32>
    %237 = arith.subf %227, %236 : vector<8x32xf32>
    %238 = arith.mulf %237, %237 : vector<8x32xf32>
    %cst_102 = arith.constant dense<0.000000e+00> : vector<8xf32>
    %239 = vector.multi_reduction <add>, %238, %cst_102 [1] : vector<8x32xf32> to vector<8xf32>
    %240 = vector.shape_cast %239 : vector<8xf32> to vector<8x1xf32>
    %cst_103 = arith.constant 3.200000e+01 : f32
    %241 = vector.broadcast %cst_103 : f32 to vector<8x1xf32>
    %242 = arith.divf %240, %241 : vector<8x1xf32>
    %243 = vector.broadcast %235 : vector<8x1xf32> to vector<8x32xf32>
    %244 = arith.subf %227, %243 : vector<8x32xf32>
    %cst_104 = arith.constant 9.99999997E-7 : f32
    %245 = vector.broadcast %cst_104 : f32 to vector<8x1xf32>
    %246 = arith.addf %242, %245 : vector<8x1xf32>
    %247 = math.rsqrt %246 : vector<8x1xf32>
    %248 = vector.broadcast %247 : vector<8x1xf32> to vector<8x32xf32>
    %249 = arith.mulf %244, %248 : vector<8x32xf32>
    %250 = vector.broadcast %229 : vector<1x32xf32> to vector<8x32xf32>
    %251 = arith.mulf %249, %250 : vector<8x32xf32>
    %252 = vector.broadcast %231 : vector<1x32xf32> to vector<8x32xf32>
    %253 = arith.addf %251, %252 : vector<8x32xf32>
    %c1_105 = arith.constant 1 : index
    %c0_106 = arith.constant 0 : index
    %c0_107 = arith.constant 0 : index
    %254 = vector.load %arg10[%c1_105, %c0_106, %c0_107] : memref<2x32x128xf32, #tpu.memory_space<vmem>>, vector<1x32x128xf32>
    %255 = vector.shape_cast %254 : vector<1x32x128xf32> to vector<32x128xf32>
    %cst_108 = arith.constant dense<0.000000e+00> : vector<8x128xf32>
    %256 = tpu.matmul %253, %255, %cst_108 {dimension_numbers = #tpu.dot_dimension_numbers<[1], [0], [0], [1], [0, 0, 1, 1], [], []>} : vector<8x32xf32>, vector<32x128xf32>, vector<8x128xf32> -> vector<8x128xf32>
    %257 = vector.extract_strided_slice %256 {offsets = [0, 0], sizes = [8, 64], strides = [1, 1]} : vector<8x128xf32> to vector<8x64xf32>
    %258 = arith.mulf %257, %257 : vector<8x64xf32>
    %259 = arith.mulf %257, %258 : vector<8x64xf32>
    %cst_109 = arith.constant 4.471500e-02 : f32
    %260 = vector.broadcast %cst_109 : f32 to vector<8x64xf32>
    %261 = arith.mulf %260, %259 : vector<8x64xf32>
    %262 = arith.addf %257, %261 : vector<8x64xf32>
    %cst_110 = arith.constant 0.797884583 : f32
    %263 = vector.broadcast %cst_110 : f32 to vector<8x64xf32>
    %264 = arith.mulf %263, %262 : vector<8x64xf32>
    %265 = math.tanh %264 : vector<8x64xf32>
    %cst_111 = arith.constant 1.000000e+00 : f32
    %266 = vector.broadcast %cst_111 : f32 to vector<8x64xf32>
    %267 = arith.addf %266, %265 : vector<8x64xf32>
    %cst_112 = arith.constant 5.000000e-01 : f32
    %268 = vector.broadcast %cst_112 : f32 to vector<8x64xf32>
    %269 = arith.mulf %268, %267 : vector<8x64xf32>
    %270 = arith.mulf %257, %269 : vector<8x64xf32>
    %271 = vector.extract_strided_slice %256 {offsets = [0, 64], sizes = [8, 64], strides = [1, 1]} : vector<8x128xf32> to vector<8x64xf32>
    %272 = arith.mulf %270, %271 : vector<8x64xf32>
    %c1_113 = arith.constant 1 : index
    %c0_114 = arith.constant 0 : index
    %c0_115 = arith.constant 0 : index
    %273 = vector.load %arg11[%c1_113, %c0_114, %c0_115] : memref<2x64x32xf32, #tpu.memory_space<vmem>>, vector<1x64x32xf32>
    %274 = vector.shape_cast %273 : vector<1x64x32xf32> to vector<64x32xf32>
    %cst_116 = arith.constant dense<0.000000e+00> : vector<8x32xf32>
    %275 = tpu.matmul %272, %274, %cst_116 {dimension_numbers = #tpu.dot_dimension_numbers<[1], [0], [0], [1], [0, 0, 1, 1], [], []>} : vector<8x64xf32>, vector<64x32xf32>, vector<8x32xf32> -> vector<8x32xf32>
    %276 = arith.addf %227, %275 : vector<8x32xf32>
    %c0_117 = arith.constant 0 : index
    %c0_118 = arith.constant 0 : index
    %277 = vector.load %arg12[%c0_117, %c0_118] : memref<1x32xf32, #tpu.memory_space<vmem>>, vector<1x32xf32>
    %c0_119 = arith.constant 0 : index
    %c0_120 = arith.constant 0 : index
    %278 = vector.load %arg13[%c0_119, %c0_120] : memref<1x32xf32, #tpu.memory_space<vmem>>, vector<1x32xf32>
    %cst_121 = arith.constant dense<0.000000e+00> : vector<8xf32>
    %279 = vector.multi_reduction <add>, %276, %cst_121 [1] : vector<8x32xf32> to vector<8xf32>
    %280 = vector.shape_cast %279 : vector<8xf32> to vector<8x1xf32>
    %cst_122 = arith.constant 3.200000e+01 : f32
    %281 = vector.broadcast %cst_122 : f32 to vector<8x1xf32>
    %282 = arith.divf %280, %281 : vector<8x1xf32>
    %283 = vector.broadcast %282 : vector<8x1xf32> to vector<8x32xf32>
    %284 = arith.subf %276, %283 : vector<8x32xf32>
    %285 = arith.mulf %284, %284 : vector<8x32xf32>
    %cst_123 = arith.constant dense<0.000000e+00> : vector<8xf32>
    %286 = vector.multi_reduction <add>, %285, %cst_123 [1] : vector<8x32xf32> to vector<8xf32>
    %287 = vector.shape_cast %286 : vector<8xf32> to vector<8x1xf32>
    %cst_124 = arith.constant 3.200000e+01 : f32
    %288 = vector.broadcast %cst_124 : f32 to vector<8x1xf32>
    %289 = arith.divf %287, %288 : vector<8x1xf32>
    %290 = vector.broadcast %282 : vector<8x1xf32> to vector<8x32xf32>
    %291 = arith.subf %276, %290 : vector<8x32xf32>
    %cst_125 = arith.constant 9.99999997E-7 : f32
    %292 = vector.broadcast %cst_125 : f32 to vector<8x1xf32>
    %293 = arith.addf %289, %292 : vector<8x1xf32>
    %294 = math.rsqrt %293 : vector<8x1xf32>
    %295 = vector.broadcast %294 : vector<8x1xf32> to vector<8x32xf32>
    %296 = arith.mulf %291, %295 : vector<8x32xf32>
    %297 = vector.broadcast %277 : vector<1x32xf32> to vector<8x32xf32>
    %298 = arith.mulf %296, %297 : vector<8x32xf32>
    %299 = vector.broadcast %278 : vector<1x32xf32> to vector<8x32xf32>
    %300 = arith.addf %298, %299 : vector<8x32xf32>
    %c0_126 = arith.constant 0 : index
    %c0_127 = arith.constant 0 : index
    %c0_128 = arith.constant 0 : index
    %301 = vector.load %arg14[%c0_126, %c0_127, %c0_128] : memref<1x8x32xf32, #tpu.memory_space<vmem>>, vector<1x8x32xf32>
    %302 = vector.shape_cast %301 : vector<1x8x32xf32> to vector<8x32xf32>
    %303 = vector.shape_cast %300 : vector<8x32xf32> to vector<1x8x32xf32>
    tpu.vector_store %arg14[%c0_126, %c0_127, %c0_128], %303 {strides = array<i32>} : memref<1x8x32xf32, #tpu.memory_space<vmem>>, vector<1x8x32xf32>,
    return
  }
  func.func @transform_0(%arg0: i32) -> (i32, i32, i32) {
    %c0_i32 = arith.constant 0 : i32
    %c0_i32_0 = arith.constant 0 : i32
    %c0_i32_1 = arith.constant 0 : i32
    return %arg0, %c0_i32, %c0_i32_0 : i32, i32, i32
  }
  func.func @transform_1(%arg0: i32) -> (i32, i32, i32) {
    %c0_i32 = arith.constant 0 : i32
    %c0_i32_0 = arith.constant 0 : i32
    %c0_i32_1 = arith.constant 0 : i32
    return %arg0, %c0_i32, %c0_i32_0 : i32, i32, i32
  }
  func.func @transform_2(%arg0: i32) -> (i32, i32) {
    %c0_i32 = arith.constant 0 : i32
    %c0_i32_0 = arith.constant 0 : i32
    %c0_i32_1 = arith.constant 0 : i32
    return %c0_i32, %c0_i32_0 : i32, i32
  }
  func.func @transform_3(%arg0: i32) -> (i32, i32, i32) {
    %c0_i32 = arith.constant 0 : i32
    %c0_i32_0 = arith.constant 0 : i32
    %c0_i32_1 = arith.constant 0 : i32
    %c0_i32_2 = arith.constant 0 : i32
    return %c0_i32, %c0_i32_0, %c0_i32_1 : i32, i32, i32
  }
  func.func @transform_4(%arg0: i32) -> (i32, i32, i32) {
    %c0_i32 = arith.constant 0 : i32
    %c0_i32_0 = arith.constant 0 : i32
    %c0_i32_1 = arith.constant 0 : i32
    %c0_i32_2 = arith.constant 0 : i32
    return %c0_i32, %c0_i32_0, %c0_i32_1 : i32, i32, i32
  }
  func.func @transform_5(%arg0: i32) -> (i32, i32, i32) {
    %c0_i32 = arith.constant 0 : i32
    %c0_i32_0 = arith.constant 0 : i32
    %c0_i32_1 = arith.constant 0 : i32
    %c0_i32_2 = arith.constant 0 : i32
    return %c0_i32, %c0_i32_0, %c0_i32_1 : i32, i32, i32
  }
  func.func @transform_6(%arg0: i32) -> (i32, i32, i32) {
    %c0_i32 = arith.constant 0 : i32
    %c0_i32_0 = arith.constant 0 : i32
    %c0_i32_1 = arith.constant 0 : i32
    %c0_i32_2 = arith.constant 0 : i32
    return %c0_i32, %c0_i32_0, %c0_i32_1 : i32, i32, i32
  }
  func.func @transform_7(%arg0: i32) -> (i32, i32, i32) {
    %c0_i32 = arith.constant 0 : i32
    %c0_i32_0 = arith.constant 0 : i32
    %c0_i32_1 = arith.constant 0 : i32
    %c0_i32_2 = arith.constant 0 : i32
    return %c0_i32, %c0_i32_0, %c0_i32_1 : i32, i32, i32
  }
  func.func @transform_8(%arg0: i32) -> (i32, i32, i32) {
    %c0_i32 = arith.constant 0 : i32
    %c0_i32_0 = arith.constant 0 : i32
    %c0_i32_1 = arith.constant 0 : i32
    %c0_i32_2 = arith.constant 0 : i32
    return %c0_i32, %c0_i32_0, %c0_i32_1 : i32, i32, i32
  }
  func.func @transform_9(%arg0: i32) -> (i32, i32, i32) {
    %c0_i32 = arith.constant 0 : i32
    %c0_i32_0 = arith.constant 0 : i32
    %c0_i32_1 = arith.constant 0 : i32
    %c0_i32_2 = arith.constant 0 : i32
    return %c0_i32, %c0_i32_0, %c0_i32_1 : i32, i32, i32
  }
  func.func @transform_10(%arg0: i32) -> (i32, i32, i32) {
    %c0_i32 = arith.constant 0 : i32
    %c0_i32_0 = arith.constant 0 : i32
    %c0_i32_1 = arith.constant 0 : i32
    %c0_i32_2 = arith.constant 0 : i32
    return %c0_i32, %c0_i32_0, %c0_i32_1 : i32, i32, i32
  }
  func.func @transform_11(%arg0: i32) -> (i32, i32) {
    %c0_i32 = arith.constant 0 : i32
    %c0_i32_0 = arith.constant 0 : i32
    %c0_i32_1 = arith.constant 0 : i32
    return %c0_i32, %c0_i32_0 : i32, i32
  }
  func.func @transform_12(%arg0: i32) -> (i32, i32) {
    %c0_i32 = arith.constant 0 : i32
    %c0_i32_0 = arith.constant 0 : i32
    %c0_i32_1 = arith.constant 0 : i32
    return %c0_i32, %c0_i32_0 : i32, i32
  }
  func.func @transform_13(%arg0: i32) -> (i32, i32, i32) {
    %c0_i32 = arith.constant 0 : i32
    %c0_i32_0 = arith.constant 0 : i32
    %c0_i32_1 = arith.constant 0 : i32
    return %arg0, %c0_i32, %c0_i32_0 : i32, i32, i32
  }
}

</mosaic_0001>

<bundles_post_ra>
// kernel: transformer_forward.1
= control target key start
LH: loop header
LB: loop body
LE: loop exit
PB: predicated region body
PF: predicated region fallthrough
CT: control target
= control target key end

     0   :  { %18 = vsyncpa [#allocation3], 0  ;;  %s4488_s0 = inlined_call_operand.hbm [shape: f32[2,8,32], index: 0, kind: input, shape index: {}, may-alias: {0,13}]   ;;  %s4489_s1 = inlined_call_operand.vmem [shape: f32[2,1,8], index: 1, kind: input, shape index: {}]   ;;  %s4490_s2 = inlined_call_operand.vmem [shape: f32[32,8], index: 2, kind: input, shape index: {}]   ;;  %s4491_s3 = inlined_call_operand.vmem [shape: f32[2,1,32], index: 3, kind: input, shape index: {}]   ;;  %s4492_s4 = inlined_call_operand.vmem [shape: f32[2,1,32], index: 4, kind: input, shape index: {}]   ;;  %s4493_s5 = inlined_call_operand.vmem [shape: f32[2,32,96], index: 5, kind: input, shape index: {}]   ;;  %s4494_s6 = inlined_call_operand.vmem [shape: f32[2,32,32], index: 6, kind: input, shape index: {}]   ;;  %s4495_s7 = inlined_call_operand.vmem [shape: f32[2,1,32], index: 7, kind: input, shape index: {}]   ;;  %s4496_s8 = inlined_call_operand.vmem [shape: f32[2,1,32], index: 8, kind: input, shape index: {}]   ;;  %s4497_s9 = inlined_call_operand.vmem [shape: f32[2,32,128], index: 9, kind: input, shape index: {}]   ;;  %s4498_s10 = inlined_call_operand.vmem [shape: f32[2,64,32], index: 10, kind: input, shape index: {}]   ;;  %s4499_s11 = inlined_call_operand.vmem [shape: f32[1,32], index: 11, kind: input, shape index: {}]   ;;  %s4500_s12 = inlined_call_operand.vmem [shape: f32[1,32], index: 12, kind: input, shape index: {}]   ;;  %s4501_s13 = inlined_call_operand.hbm [shape: f32[2,8,32], index: 13, kind: output, shape index: {}, may-alias: {0,13}]  }
   0x1   :  { %20 = vsyncpa [#allocation3 + $0x1], 0 }
   0x2   :  { %21 = vsyncpa [#allocation4], 0 }
   0x3   :  { %23 = vsyncpa [#allocation4 + $0x1], 0  ;;  %s3893_s25 = smov 0   ;;  %s3895_s26 = smov 0  }
   0x4   :  { %s3897_s27 = smov 0   ;;  %s3899_s28 = smov 0  }
   0x5 LB: > { %4517 = sst [smem:[#allocation8_spill]] %s3793_s25  ;;  %s3914_s29 = sadd.s32 4294967295, %s3805_s28   ;;  %s3805_s28 = sphi %s3899_s28, %s4542_s28   ;;  %s3801_s27 = sphi %s3897_s27, %s4544_s27   ;;  %s3797_s26 = sphi %s3895_s26, %s4546_s26   ;;  %s3793_s25 = sphi %s3893_s25, %s4545_s25  }
   0x6   : > { %4518 = sst [smem:[#allocation9_spill]] %s3801_s27  ;;  %s3169_s30 = sadd.s32 4294967294, %s3805_s28  }
   0x7   : > { %s3918_s14 = sadd.s32 1, %s3805_s28   ;;  %s36_s15 = sadd.s32 1, %s3801_s27 }
   0x8   : > { %4519 = sst [smem:[#allocation10_spill]] %s3918_s14  ;;  %s33_s16 = ssub.s32 %s3805_s28, %s3918_s14 }
   0x9   : > { %p43_p0 = scmp.ne.s32.totalorder %s3801_s27, %s3797_s26  ;;  %p34_p1 = scmp.eq.s32.totalorder %s33_s16, 0 }
   0xa   : > { %p44_p2 = scmp.eq.s32.totalorder %s3805_s28, 0  ;;  %p49_p3 = scmp.ne.s32.totalorder %s3797_s26, %s3793_s25 }
   0xb   : > { %p50_p4 = scmp.eq.s32.totalorder %s3914_s29, 0  ;;  %p330_p7 = scmp.eq.s32.totalorder %s3914_s29, 1 }
   0xc   : > { %s3930_s17 = scalar_select %p34_p1, %s3801_s27, %s36_s15  }
   0xd   : > { %p3932_p5 = por %p44_p2, %p43_p0  ;;  %p3936_p6 = por %p50_p4, %p49_p3 }
   0xe   : > { %4520 = sst [smem:[#allocation11_spill]] %s3930_s17  ;;  %p336_p8 = scmp.eq.s32.totalorder %s3169_s30, 1 }
   0xf   : > { %p3615_p10 = scmp.lt.s32.totalorder %s3805_s28, 2  ;;  %p3943_p11 = por %p330_p7, %p43_p0 }
  0x10   : > { %p3947_p12 = por %p336_p8, %p49_p3  ;;  %s389_s22 = sand.u32 1, %s3801_s27  }
  0x11   : > { %s4523_s20 = scalar_select %p3943_p11, 1, 0 }
  0x12   : > { %s4524_s21 = scalar_select %p3947_p12, 1, 0 }
  0x13   : > { %s3173_s23 = sshll.u32 %s3805_s28, 7  ;;  %s3172_s24 = sshll.u32 %s389_s22, 3 }
  0x14   : > { %s3956_s17 = scalar_lea.hbm %s4488_s0, %s3173_s23  ;;  %s393_s30 = scalar_lea.vmem [#allocation2], %s3172_s24 }
  0x15   : > { %s400_s14 = sshll.u32 %s393_s30, 4  ;;  %p3960_p13 = pnand %p3615_p10, %p3932_p5  ;;  %s3964_s14 = int_to_ptr.vmem [resolvable:$true] %s400_s14 }
  0x16   : > { %s390_s15 = scalar_lea.sflag [#allocation3], %s389_s22  ;;  %s3709_s23 = scalar_lea.hbm %s3956_s17, 128 }
  0x17   : > { %p3710_p2 = scmp.ne.s32.totalorder %s3956_s17, %s3709_s23  ;;  %p3711_p3 = pneg %p3960_p13 }
  0x18   : > { %s3714_s16 = scalar_lea.hbm %s4488_s0, 256  ;;  %p3715_p5 = scmp.lt.u32.totalorder %s3956_s17, %s4488_s0 }
  0x19   : > { %p3712_p4 = pnand %p3711_p3, %p3710_p2  ;;  %p3716_p8 = scmp.lt.u32.totalorder %s3714_s16, %s3709_s23 }
  0x1a   : > { %p3718_p9 = scmp.lt.u32.totalorder %s3709_s23, %s3956_s17 }
  0x1b   : > { %p3713_p7 = pneg %p3712_p4  ;;  %p3717_p10 = por %p3716_p8, %p3715_p5 }
  0x1d   : > { %p3719_p0 = por %p3718_p9, %p3717_p10 }
  0x1f   : > { %p3720_p1 = pnand %p3719_p0, %p3713_p7 }
  0x21   : > { %3723 = shalt.err (!%p3720_p1)
}
  0x22   : > { %s3724_s22 = scalar_lea.vmem %s3964_s14, 128  ;;  %s3807_s18 = smov [#allocation2]  }
  0x23   : > { %p3725_p2 = scmp.ne.s32.totalorder %s3964_s14, %s3724_s22  ;;  %s3729_s24 = sshll.u32 %s3807_s18, 4  ;;  %s3730_s24 = int_to_ptr.vmem [resolvable:$false] %s3729_s24 }
  0x24   : > { %s3731_s27 = scalar_lea.vmem %s3730_s24, 256  ;;  %p3732_p11 = scmp.lt.s32.totalorder %s3964_s14, %s3730_s24 }
  0x25   : > { %p3727_p4 = pnand %p3725_p2, %p3711_p3  ;;  %p3733_p5 = scmp.lt.s32.totalorder %s3731_s27, %s3724_s22 }
  0x27   : > { %p3728_p12 = pneg %p3727_p4  ;;  %p3734_p8 = por %p3733_p5, %p3732_p11 }
  0x29   : > { %p3735_p9 = pnand %p3734_p8, %p3728_p12 }
  0x2b   : > { %3738 = shalt.err (!%p3735_p9)
}
  0x2c   : > { %3610 = dma.hbm_to_vmem [thread:$0]  (!%p3960_p13), %s3956_s17, 128, %s3964_s14, %s390_s15  }
  0x2d   : > { %p4526_p0 = scmp.lt.s32.totalorder %s3805_s28, 3  ;;  %p4527_p1 = scmp.ge.s32.totalorder %s3805_s28, 1 }
  0x2f   : > { %p412_p3 = pnand %p4527_p1, %p4526_p0 }
  0x30   : > { %s3998_s23 = sand.u32 (!%p412_p3), 1, %s3797_s26  }
  0x31   : > { %415 = sbr.rel (%p412_p3) target bundleno = 5417 (0x1529), region = 72  ;;  %s4507_s16 = sshll.u32 (!%p412_p3), %s3998_s23, 3 }
  0x32   : > { %s418_s30 = scalar_lea.sflag (!%p412_p3), [#allocation3], %s3998_s23  ;;  %s421_s25 = scalar_lea.vmem (!%p412_p3), [#allocation2], %s4507_s16 }
  0x38   : > { %3784 = dma.done.wait (%p3936_p6), %s418_s30, 128  }
  0x39   : > { %3786 = vsyncadd (%p3936_p6), %s418_s30, 4294967168  ;;  %vm480_vm0 = vcmask 261120   ;;  %v4008_v0 = vld [vmem:[%s421_s25] sm:$0xff]  ;;  %v511_v9 = vld [vmem:[%s4493_s5 + $0x10] sm:$0xff]  ;;  %v3808_v10 = vmov 0.0|0.0   ;;  %vm3809_vm1 = vmmov 0   ;;  %v903_v33 = vlaneseq }
  0x3a   : > { %v481_v1 = vsel %vm480_vm0, %v4008_v0, 0.0  ;;  %v509_v7 = vld [vmem:[%s4493_s5] sm:$0xff]  ;;  %v510_v8 = vld [vmem:[%s4493_s5 + $0x8] sm:$0xff]  ;;  %3541 = vmatprep.subr.bf16.mxu0 %v3808_v10  ;;  %v512_v12 = vld [vmem:[%s4493_s5 + $0x18] sm:$0xff]  ;;  %v3810_v13 = vmov 0.0   ;;  %s4515_s19 = smov 120  }
  0x3b   : > { %482 = vadd.xlane.f32.xlu0 %v481_v1  ;;  %v3542_v11 = vpack.c.bf16 %v510_v8, %v509_v7  ;;  %3347 = vmatprep.mubr.msk.f32.mxu0 %vm3809_vm1, %v3810_v13  ;;  %v3545_v14 = vpack.c.bf16 %v512_v12, %v511_v9  ;;  %v3177_v19 = vld [vmem:[%s4491_s3] ss:$0 sm:$0xff]  ;;  %s4516_s15 = smov 96   ;;  %s3813_s22 = smov 88   ;;  %vm589_vm2 = vcmask 64512   ;;  %v904_v36 = vshrl.u32 %v903_v33, 7 }
  0x3c   : > { %3355 = vmatprep.subr.mxu1 %v3810_v13  ;;  %3357 = vmatprep.mubr.msk.f32.mxu1 %vm3809_vm1, %v3810_v13  ;;  %v3178_v21 = vld [vmem:[%s4492_s4] ss:$0 sm:$0xff]  ;;  %s4510_s18 = smov 80   ;;  %s4514_s24 = smov 112   ;;  %v4096_v44 = vld [vmem:[%s4490_s2 + $0x8] sm:$0xff]  ;;  %v4104_v50 = vld [vmem:[%s4490_s2 + $0x10] sm:$0xff] }
  0x3d   : > { %3543 = vmatpush3.bf16.msra.mxu0 %v3542_v11  ;;  %s4508_s27 = smov 72   ;;  %s4509_s30 = smov 104   ;;  %v905_v38 = vsub.s32 0, %v904_v36  ;;  %v4088_v39 = vld [vmem:[%s4490_s2] sm:$0xff]  ;;  %v4114_v58 = vld [vmem:[%s4490_s2 + $0x18] sm:$0xff]  ;;  %vm1688_vm3 = vcmask 523264  }
  0x3e   : > { %3544 = vmatprep.subr.bf16.mxu0 %v3808_v10  ;;  %p467_p6 = scmp.lt.s32.totalorder %s3914_s29, 1  ;;  %s4513_s17 = smov 56  }
  0x3f   : > { %s4512_s14 = smov 48   ;;  %p4538_p12 = scmp.ne.s32.totalorder %s4523_s20, 0 }
  0x40   : > { %s468_s25 = scalar_select %p467_p6, %s3914_s29, 1 }
  0x41   : > { %3546 = vmatpush3.bf16.msra.mxu0 %v3545_v14 }
  0x42   : > { %3350 = vmatprep.subr.mxu0 %v3810_v13  ;;  %s469_s16 = scalar_lea.vmem %s4489_s1, %s468_s25  ;;  %s3818_s25 = smov 64  }
  0x43   : > { %v471_v34 = vld [vmem:[%s469_s16] sm:$0x1]  ;;  %s4511_s16 = smov 40  }
  0x44   : > { %v472_v35 = vsub.f32 1.0, %v471_v34 }
  0x46   : > { %v473_v37 = vmul.f32 -1e+09, %v472_v35 }
  0x48   : > { %v4090_v40 = vrot.slane %v473_v37, %v905_v38 }
  0xc8   : > { %v483_v2 = vpop.xlane.xlu0 %482 }
  0xc9   : > { %v485_v3 = vmul.f32 0.03125, %v483_v2 }
  0xcb   : > { %v486_v4 = vsub.f32 %v4008_v0, %v485_v3 }
  0xcd   : > { %v487_v5 = vmul.f32 %v486_v4, %v486_v4 }
  0xcf   : > { %v488_v6 = vsel %vm480_vm0, %v487_v5, 0.0 }
  0xd0   : > { %489 = vadd.xlane.f32.xlu0 %v488_v6 }
 0x15d   : > { %v490_v15 = vpop.xlane.xlu0 %489 }
 0x15e   : > { %v491_v16 = vmul.f32 0.03125, %v490_v15 }
 0x160   : > { %v492_v17 = vadd.f32 1e-06, %v491_v16 }
 0x162   : > { %3663 = vrsqrt.f32 %v492_v17 }
 0x16c   : > { %v3664_v18 = vpop.eup %3663 }
 0x16d   : > { %v494_v20 = vmul.f32 %v3664_v18, %v486_v4 }
 0x16f   : > { %v501_v22 = vmul.f32 %v3177_v19, %v494_v20 }
 0x171   : > { %v508_v23 = vadd.f32 %v3178_v21, %v501_v22 }
 0x173   : > { %3348 = vmatmul.mubr.msk.f32.vlgmr.msra.gmra.mrb[0].mxu0 %vm480_vm0, %v508_v23 }
 0x174   : > { %3352 = vmatprep.mubr.msk.f32.mxu0 %vm3809_vm1, %v3810_v13 }
 0x246   : > { %v4043_v24 = vpop.f32.mrb[0].mxu0 }
 0x247   : > { %664 = vrot.lane.b32.xlu0 %v4043_v24, %s4515_s19  ;;  %587 = vrot.lane.b32.xlu1 %v4043_v24, %s4516_s15  ;;  %v3349_v25 = vpop.f32.mrb[1].mxu0  ;;  %s4535_s15 = smov 48   ;;  %s4537_s19 = sshll.u32 %s3998_s23, 3 }
 0x24b   : > { %666 = vrot.lane.b32.xlu1 %v4043_v24, %s3813_s22 }
 0x24f   : > { %744 = vrot.lane.b32.xlu1 %v4043_v24, %s4510_s18  ;;  %s4530_s18 = smov 112  }
 0x253   : > { %742 = vrot.lane.b32.xlu1 %v4043_v24, %s4514_s24  ;;  %s4528_s24 = smov 96  }
 0x257   : > { %822 = vrot.lane.b32.xlu1 %v4043_v24, %s4508_s27  ;;  %s4536_s27 = smov 40  }
 0x25b   : > { %820 = vrot.lane.b32.xlu1 %v4043_v24, %s4509_s30  ;;  %s4532_s30 = smov 104  }
 0x2b9   : > { %v588_v26 = vpop.permute.xlu1 %587  ;;  %v665_v28 = vpop.permute.xlu0 %664 }
 0x2ba   : > { %3351 = vmatpush3.xpose.msk.msra.mxu0 %vm589_vm2, %v588_v26 }
 0x2bb   : > { %3360 = vmatprep.subr.mxu0 %v3810_v13 }
 0x2bd   : > { %3353 = vmatmul.mubr.msk.f32.vlgmr.msra.gmra.mrb[2].mxu0 %vm589_vm2, %v4043_v24  ;;  %v667_v27 = vpop.permute.xlu1 %666 }
 0x2be   : > { %3356 = vmatpush3.xpose.msk.msra.mxu1 %vm589_vm2, %v667_v27  ;;  %3362 = vmatprep.mubr.msk.f32.mxu0 %vm3809_vm1, %v3810_v13 }
 0x2bf   : > { %3365 = vmatprep.subr.mxu1 %v3810_v13 }
 0x2c1   : > { %3358 = vmatmul.mubr.msk.f32.vlgmr.msra.gmra.mrb[0].mxu1 %vm589_vm2, %v665_v28  ;;  %v745_v29 = vpop.permute.xlu1 %744 }
 0x2c2   : > { %3361 = vmatpush3.xpose.msk.msra.mxu0 %vm589_vm2, %v745_v29  ;;  %3367 = vmatprep.mubr.msk.f32.mxu1 %vm3809_vm1, %v3810_v13 }
 0x2c3   : > { %3370 = vmatprep.subr.mxu0 %v3810_v13 }
 0x2c5   : > { %v743_v30 = vpop.permute.xlu1 %742 }
 0x2c6   : > { %3363 = vmatmul.mubr.msk.f32.vlgmr.msra.gmra.mrb[4].mxu0 %vm589_vm2, %v743_v30 }
 0x2c7   : > { %3372 = vmatprep.mubr.msk.f32.mxu0 %vm3809_vm1, %v3810_v13 }
 0x2c9   : > { %v823_v31 = vpop.permute.xlu1 %822 }
 0x2ca   : > { %3366 = vmatpush3.xpose.msk.msra.mxu1 %vm589_vm2, %v823_v31 }
 0x2cb   : > { %3375 = vmatprep.subr.mxu1 %v3810_v13 }
 0x2cd   : > { %v821_v32 = vpop.permute.xlu1 %820 }
 0x2ce   : > { %3368 = vmatmul.mubr.msk.f32.vlgmr.msra.gmra.mrb[2].mxu1 %vm589_vm2, %v821_v32 }
 0x2cf   : > { %3377 = vmatprep.mubr.msk.f32.mxu1 %vm3809_vm1, %v3810_v13 }
 0x390   : > { %v660_v41 = vpop.f32.mrb[2].mxu0 }
 0x391   : > { %v898_v42 = vadd.f32 %v660_v41, %v4088_v39  ;;  %v3354_v43 = vpop.f32.mrb[3].mxu0  ;;  %v956_v41 = vld [vmem:[%s4494_s6] sm:$0xff] }
 0x392   : > { %3376 = vmatpush3.msra.mxu1 %v956_v41 }
 0x393   : > { %v908_v45 = vadd.f32 %v4090_v40, %v898_v42  ;;  %3385 = vmatprep.subr.mxu1 %v3810_v13  ;;  %v957_v42 = vld [vmem:[%s4494_s6 + $0x8] sm:$0xff] }
 0x394   : > { %v738_v46 = vpop.f32.mrb[0].mxu1 }
 0x395   : > { %v899_v47 = vadd.f32 %v738_v46, %v4096_v44  ;;  %v3359_v48 = vpop.f32.mrb[1].mxu1  ;;  %v912_v49 = vsel %vm589_vm2, %v908_v45, -inf  ;;  %v958_v46 = vld [vmem:[%s4494_s6 + $0x10] sm:$0xff] }
 0x396   : > { %913 = vmax.xlane.f32.xlu1 %v912_v49  ;;  %v959_v49 = vld [vmem:[%s4494_s6 + $0x18] sm:$0xff] }
 0x397   : > { %v909_v51 = vadd.f32 %v4090_v40, %v899_v47 }
 0x399   : > { %v816_v52 = vpop.f32.mrb[4].mxu0  ;;  %v915_v53 = vsel %vm589_vm2, %v909_v51, -inf }
 0x39a   : > { %v900_v54 = vadd.f32 %v816_v52, %v4104_v50  ;;  %916 = vmax.xlane.f32.xlu0 %v915_v53  ;;  %v3364_v55 = vpop.f32.mrb[5].mxu0 }
 0x39c   : > { %v910_v56 = vadd.f32 %v4090_v40, %v900_v54 }
 0x39e   : > { %v918_v57 = vsel %vm589_vm2, %v910_v56, -inf }
 0x39f   : > { %919 = vmax.xlane.f32.xlu1 %v918_v57 }
 0x3a1   : > { %v894_v59 = vpop.f32.mrb[2].mxu1 }
 0x3a2   : > { %v901_v60 = vadd.f32 %v894_v59, %v4114_v58  ;;  %v3369_v61 = vpop.f32.mrb[3].mxu1 }
 0x3a4   : > { %v911_v62 = vadd.f32 %v4090_v40, %v901_v60 }
 0x3a6   : > { %v921_v63 = vsel %vm589_vm2, %v911_v62, -inf }
 0x3a7   : > { %922 = vmax.xlane.f32.xlu0 %v921_v63 }
 0x423   : > { %v914_v1 = vpop.xlane.xlu1 %913 }
 0x424   : > { %v924_v2 = vsub.f32 %v908_v45, %v914_v1 }
 0x426   : > { %v928_v3 = vmul.f32 1.442695, %v924_v2  ;;  %v1589_v2 = vld [vmem:[%s4497_s9] sm:$0xff] }
 0x427   : > { %v917_v4 = vpop.xlane.xlu0 %916 }
 0x428   : > { %3665 = vpow2.f32 %v928_v3  ;;  %v925_v5 = vsub.f32 %v909_v51, %v917_v4  ;;  %v1591_v4 = vld [vmem:[%s4497_s9 + $0x10] sm:$0xff] }
 0x42a   : > { %v930_v6 = vmul.f32 1.442695, %v925_v5  ;;  %v1592_v5 = vld [vmem:[%s4497_s9 + $0x18] sm:$0xff] }
 0x42c   : > { %3667 = vpow2.f32 %v930_v6  ;;  %v920_v18 = vpop.xlane.xlu1 %919  ;;  %v3551_v6 = vpack.c.bf16 %v1592_v5, %v1591_v4  ;;  %v3203_v5 = vld [vmem:[%s4492_s4 + $0x1] ss:$0 sm:$0xff] }
 0x42d   : > { %v926_v19 = vsub.f32 %v910_v56, %v920_v18  ;;  %v1680_v18 = vld [vmem:[%s4498_s10] sm:$0xff] }
 0x42f   : > { %v932_v20 = vmul.f32 1.442695, %v926_v19  ;;  %v1681_v19 = vld [vmem:[%s4498_s10 + $0x8] sm:$0xff] }
 0x432   : > { %v3666_v7 = vpop.eup %3665 }
 0x433   : > { %v936_v8 = vsel %vm589_vm2, %v3666_v7, 0.0 }
 0x434   : > { %v923_v9 = vpop.xlane.xlu0 %922  ;;  %937 = vadd.xlane.f32.xlu1 %v936_v8 }
 0x435   : > { %v927_v11 = vsub.f32 %v911_v62, %v923_v9 }
 0x436   : > { %v3668_v12 = vpop.eup %3667 }
 0x437   : > { %v934_v14 = vmul.f32 1.442695, %v927_v11  ;;  %v939_v15 = vsel %vm589_vm2, %v3668_v12, 0.0 }
 0x438   : > { %940 = vadd.xlane.f32.xlu0 %v939_v15  ;;  %v3197_v15 = vld [vmem:[%s4496_s8] ss:$0 sm:$0xff] }
 0x439   : > { %3669 = vpow2.f32 %v934_v14 }
 0x43a   : > { %3671 = vpow2.f32 %v932_v20  ;;  %v1682_v20 = vld [vmem:[%s4498_s10 + $0x10] sm:$0xff] }
 0x443   : > { %v3670_v16 = vpop.eup %3669 }
 0x444   : > { %v945_v17 = vsel %vm589_vm2, %v3670_v16, 0.0  ;;  %v3672_v21 = vpop.eup %3671 }
 0x445   : > { %946 = vadd.xlane.f32.xlu0 %v945_v17  ;;  %960 = vrot.lane.b32.xlu1 %v4043_v24, %s3818_s25  ;;  %v942_v22 = vsel %vm589_vm2, %v3672_v21, 0.0 }
 0x45b   : > { %1110 = vrot.lane.b32.xlu0 %v4043_v24, %s4513_s17  ;;  %s4533_s17 = smov 72  }
 0x469   : > { %943 = vadd.xlane.f32.xlu1 %v942_v22  ;;  %v1683_v22 = vld [vmem:[%s4498_s10 + $0x18] sm:$0xff] }
 0x47a   : > { %1260 = vrot.lane.b32.xlu1 %v4043_v24, %s4512_s14  ;;  %s4531_s14 = smov 80  }
 0x47e   : > { %1410 = vrot.lane.b32.xlu1 %v4043_v24, %s4511_s16  ;;  %s4529_s16 = smov 120  }
 0x4c1   : > { %v938_v23 = vpop.xlane.xlu1 %937 }
 0x4c2   : > { %3673 = vrcp.f32 %v938_v23  ;;  %v3557_v23 = vpack.c.bf16 %v1683_v22, %v1682_v20 }
 0x4c5   : > { %v961_v25 = vpop.permute.xlu1 %960  ;;  %v941_v26 = vpop.xlane.xlu0 %940 }
 0x4c6   : > { %3371 = vmatpush3.msra.mxu0 %v961_v25  ;;  %3675 = vrcp.f32 %v941_v26  ;;  %v1684_v25 = vld [vmem:[%s4498_s10 + $0x20] sm:$0xff]  ;;  %v1685_v26 = vld [vmem:[%s4498_s10 + $0x28] sm:$0xff] }
 0x4c7   : > { %3380 = vmatprep.subr.mxu0 %v3810_v13 }
 0x4cc   : > { %v3674_v27 = vpop.eup %3673 }
 0x4cd   : > { %v952_v28 = vmul.f32 %v3674_v27, %v3666_v7  ;;  %v3560_v27 = vpack.c.bf16 %v1685_v26, %v1684_v25 }
 0x4cf   : > { %3373 = vmatmul.mubr.msk.f32.vlgmr.msra.gmra.mrb[6].mxu0 %vm589_vm2, %v952_v28  ;;  %v1686_v28 = vld [vmem:[%s4498_s10 + $0x30] sm:$0xff] }
 0x4d0   : > { %3382 = vmatprep.mubr.msk.f32.mxu0 %vm3809_vm1, %v3810_v13  ;;  %v3676_v30 = vpop.eup %3675 }
 0x4d1   : > { %v953_v31 = vmul.f32 %v3676_v30, %v3668_v12  ;;  %v3196_v12 = vld [vmem:[%s4495_s7] ss:$0 sm:$0xff] }
 0x4d2   : > { %v947_v29 = vpop.xlane.xlu0 %946 }
 0x4d6   : > { %v1111_v32 = vpop.permute.xlu0 %1110 }
 0x4d7   : > { %3381 = vmatpush3.msra.mxu0 %v1111_v32 }
 0x4d8   : > { %3383 = vmatmul.mubr.msk.f32.vlgmr.msra.gmra.mrb[8].mxu0 %vm589_vm2, %v953_v31  ;;  %3390 = vmatprep.subr.mxu0 %v3810_v13 }
 0x4d9   : > { %3392 = vmatprep.mubr.msk.f32.mxu0 %vm3809_vm1, %v3810_v13 }
 0x4f6   : > { %v944_v24 = vpop.xlane.xlu1 %943 }
 0x4f7   : > { %3677 = vrcp.f32 %v944_v24 }
 0x4f8   : > { %3679 = vrcp.f32 %v947_v29  ;;  %v1687_v29 = vld [vmem:[%s4498_s10 + $0x38] sm:$0xff] }
 0x4f9   : > { %v3563_v30 = vpack.c.bf16 %v1687_v29, %v1686_v28 }
 0x4fa   : > { %v1261_v33 = vpop.permute.xlu1 %1260 }
 0x4fb   : > { %3391 = vmatpush3.msra.mxu0 %v1261_v33 }
 0x4fc   : > { %3400 = vmatprep.subr.mxu0 %v3810_v13 }
 0x4fe   : > { %v1411_v37 = vpop.permute.xlu1 %1410 }
 0x501   : > { %v3678_v34 = vpop.eup %3677 }
 0x502   : > { %v954_v35 = vmul.f32 %v3678_v34, %v3672_v21  ;;  %v3680_v36 = vpop.eup %3679  ;;  %v3554_v21 = vpack.c.bf16 %v1681_v19, %v1680_v18 }
 0x503   : > { %v955_v38 = vmul.f32 %v3680_v36, %v3670_v16 }
 0x504   : > { %3393 = vmatmul.mubr.msk.f32.vlgmr.msra.gmra.mrb[10].mxu0 %vm589_vm2, %v954_v35 }
 0x505   : > { %3401 = vmatpush3.msra.mxu0 %v1411_v37  ;;  %3402 = vmatprep.mubr.msk.f32.mxu0 %vm3809_vm1, %v3810_v13 }
 0x506   : > { %3547 = vmatprep.subr.bf16.mxu0 %v3808_v10 }
 0x508   : > { %3403 = vmatmul.mubr.msk.f32.vlgmr.msra.gmra.mrb[12].mxu0 %vm589_vm2, %v955_v38 }
 0x509   : > { %3418 = vmatprep.mubr.msk.f32.mxu0 %vm3809_vm1, %v3810_v13 }
 0x5a2   : > { %v1032_v43 = vpop.f32.mrb[6].mxu0 }
 0x5a3   : > { %v3374_v45 = vpop.f32.mrb[7].mxu0  ;;  %3378 = vmatmul.mubr.msk.f32.vlgmr.msra.gmra.mrb[4].mxu1 %vm589_vm2, %v1032_v43 }
 0x5a4   : > { %3386 = vmatpush3.msra.mxu1 %v957_v42  ;;  %3387 = vmatprep.mubr.msk.f32.mxu1 %vm3809_vm1, %v3810_v13 }
 0x5a5   : > { %3395 = vmatprep.subr.mxu1 %v3810_v13 }
 0x5ab   : > { %v1182_v47 = vpop.f32.mrb[8].mxu0 }
 0x5ac   : > { %v3384_v48 = vpop.f32.mrb[9].mxu0  ;;  %3388 = vmatmul.mubr.msk.f32.vlgmr.msra.gmra.mrb[4].mxu1 %vm589_vm2, %v1182_v47 }
 0x5ad   : > { %3396 = vmatpush3.msra.mxu1 %v958_v46  ;;  %3397 = vmatprep.mubr.msk.f32.mxu1 %vm3809_vm1, %v3810_v13 }
 0x5ae   : > { %3405 = vmatprep.subr.mxu1 %v3810_v13 }
 0x5d7   : > { %v1332_v51 = vpop.f32.mrb[10].mxu0 }
 0x5d8   : > { %v3394_v52 = vpop.f32.mrb[11].mxu0  ;;  %3398 = vmatmul.mubr.msk.f32.vlgmr.msra.gmra.mrb[4].mxu1 %vm589_vm2, %v1332_v51 }
 0x5d9   : > { %3406 = vmatpush3.msra.mxu1 %v959_v49  ;;  %3407 = vmatprep.mubr.msk.f32.mxu1 %vm3809_vm1, %v3810_v13 }
 0x5da   : > { %3553 = vmatprep.subr.bf16.mxu1 %v3808_v10 }
 0x5db   : > { %v1482_v53 = vpop.f32.mrb[12].mxu0 }
 0x5dc   : > { %v3404_v54 = vpop.f32.mrb[13].mxu0 }
 0x5e0   : > { %3408 = vmatmul.mubr.msk.f32.vlgmr.msra.gmra.mrb[4].mxu1 %vm589_vm2, %v1482_v53 }
 0x5e1   : > { %3437 = vmatprep.mubr.msk.f32.mxu1 %vm3809_vm1, %v3810_v13  ;;  %3555 = vmatpush3.bf16.msra.mxu1 %v3554_v21 }
 0x5e2   : > { %3556 = vmatprep.subr.bf16.mxu1 %v3808_v10 }
 0x5e5   : > { %3558 = vmatpush3.bf16.msra.mxu1 %v3557_v23 }
 0x5e6   : > { %3559 = vmatprep.subr.bf16.mxu1 %v3808_v10 }
 0x5e9   : > { %3561 = vmatpush3.bf16.msra.mxu1 %v3560_v27 }
 0x5ea   : > { %3562 = vmatprep.subr.bf16.mxu1 %v3808_v10 }
 0x5ed   : > { %3564 = vmatpush3.bf16.msra.mxu1 %v3563_v30 }
 0x5ee   : > { %3456 = vmatprep.subr.mxu1 %v3810_v13 }
 0x6b3   : > { %v1555_v55 = vpop.f32.mrb[4].mxu1 }
 0x6b4   : > { %v4176_v56 = vadd.f32 %v1555_v55, %v4008_v0  ;;  %v3409_v57 = vpop.f32.mrb[5].mxu1  ;;  %v1590_v0 = vld [vmem:[%s4497_s9 + $0x8] sm:$0xff] }
 0x6b5   : > { %v3548_v3 = vpack.c.bf16 %v1590_v0, %v1589_v2  ;;  %v3204_v57 = vld [vmem:[%s4493_s5 + $0x20] sm:$0xff] }
 0x6b6   : > { %v1562_v59 = vsel %vm480_vm0, %v4176_v56, 0.0 }
 0x6b7   : > { %1563 = vadd.xlane.f32.xlu0 %v1562_v59  ;;  %3549 = vmatpush3.bf16.msra.mxu0 %v3548_v3  ;;  %v3202_v3 = vld [vmem:[%s4491_s3 + $0x1] ss:$0 sm:$0xff] }
 0x6b8   : > { %3550 = vmatprep.subr.bf16.mxu0 %v3808_v10 }
 0x6bb   : > { %3552 = vmatpush3.bf16.msra.mxu0 %v3551_v6 }
 0x6bc   : > { %3565 = vmatprep.subr.bf16.mxu0 %v3808_v10 }
 0x744   : > { %v1564_v60 = vpop.xlane.xlu0 %1563 }
 0x745   : > { %v1565_v61 = vmul.f32 0.03125, %v1564_v60  ;;  %v3206_v60 = vld [vmem:[%s4493_s5 + $0x30] sm:$0xff] }
 0x747   : > { %v1566_v62 = vsub.f32 %v4176_v56, %v1565_v61  ;;  %v3207_v61 = vld [vmem:[%s4493_s5 + $0x38] sm:$0xff] }
 0x749   : > { %v1567_v63 = vmul.f32 %v1566_v62, %v1566_v62 }
 0x74b   : > { %v1568_v1 = vsel %vm480_vm0, %v1567_v63, 0.0 }
 0x74c   : > { %1569 = vadd.xlane.f32.xlu1 %v1568_v1 }
 0x7d9   : > { %v1570_v7 = vpop.xlane.xlu1 %1569 }
 0x7da   : > { %v1571_v8 = vmul.f32 0.03125, %v1570_v7 }
 0x7dc   : > { %v1572_v9 = vadd.f32 1e-06, %v1571_v8 }
 0x7de   : > { %3681 = vrsqrt.f32 %v1572_v9 }
 0x7e8   : > { %v3682_v11 = vpop.eup %3681 }
 0x7e9   : > { %v1574_v14 = vmul.f32 %v3682_v11, %v1566_v62  ;;  %v3569_v62 = vpack.c.bf16 %v3207_v61, %v3206_v60 }
 0x7eb   : > { %v1581_v16 = vmul.f32 %v3196_v12, %v1574_v14 }
 0x7ed   : > { %v1588_v17 = vadd.f32 %v3197_v15, %v1581_v16 }
 0x7ef   : > { %3419 = vmatmul.mubr.msk.f32.vlgmr.msra.gmra.mrb[14].mxu0 %vm480_vm0, %v1588_v17 }
 0x7f0   : > { %3448 = vmatprep.mubr.msk.f32.mxu0 %vm3809_vm1, %v3810_v13 }
 0x8c2   : > { %v1662_v31 = vpop.f32.mrb[14].mxu0 }
 0x8c3   : > { %1676 = vrot.lane.b32.xlu0 %v1662_v31, %s3818_s25  ;;  %v3420_v32 = vpop.f32.mrb[15].mxu0  ;;  %v1666_v24 = vmul.f32 %v1662_v31, %v1662_v31 }
 0x8c5   : > { %v1667_v33 = vmul.f32 %v1666_v24, %v1662_v31 }
 0x8c7   : > { %v1668_v34 = vmul.f32 0.044715, %v1667_v33 }
 0x8c9   : > { %v1669_v35 = vadd.f32 %v1668_v34, %v1662_v31 }
 0x8cb   : > { %v1670_v36 = vmul.f32 0.7978846, %v1669_v35 }
 0x8cd   : > { %3683 = vtanh.f32 %v1670_v36 }
 0x8d7   : > { %v3684_v37 = vpop.eup %3683 }
 0x8d8   : > { %v1672_v38 = vadd.f32 1.0, %v3684_v37 }
 0x8da   : > { %v1673_v41 = vmul.f32 0.5, %v1672_v38 }
 0x8dc   : > { %v1674_v42 = vmul.f32 %v1673_v41, %v1662_v31 }
 0x935   : > { %v1677_v43 = vpop.permute.xlu0 %1676 }
 0x936   : > { %v1679_v45 = vmul.f32 %v1677_v43, %v1674_v42 }
 0x938   : > { %3438 = vmatmul.mubr.msk.f32.vlgmr.msra.gmra.mrb[6].mxu1 %vm1688_vm3, %v1679_v45 }
 0x939   : > { %3458 = vmatprep.mubr.msk.f32.mxu1 %vm3809_vm1, %v3810_v13 }
 0xa0b   : > { %v1758_v46 = vpop.f32.mrb[6].mxu1 }
 0xa0c   : > { %v4238_v47 = vadd.f32 %v4176_v56, %v1758_v46  ;;  %v3439_v48 = vpop.f32.mrb[7].mxu1  ;;  %v3205_v56 = vld [vmem:[%s4493_s5 + $0x28] sm:$0xff] }
 0xa0d   : > { %v3566_v59 = vpack.c.bf16 %v3205_v56, %v3204_v57 }
 0xa0e   : > { %v1767_v49 = vsel %vm480_vm0, %v4238_v47, 0.0 }
 0xa0f   : > { %1768 = vadd.xlane.f32.xlu1 %v1767_v49  ;;  %3567 = vmatpush3.bf16.msra.mxu0 %v3566_v59 }
 0xa10   : > { %3568 = vmatprep.subr.bf16.mxu0 %v3808_v10 }
 0xa13   : > { %3570 = vmatpush3.bf16.msra.mxu0 %v3569_v62 }
 0xa14   : > { %3451 = vmatprep.subr.mxu0 %v3810_v13 }
 0xa9c   : > { %v1769_v51 = vpop.xlane.xlu1 %1768 }
 0xa9d   : > { %v1770_v52 = vmul.f32 0.03125, %v1769_v51 }
 0xa9f   : > { %v1771_v53 = vsub.f32 %v4238_v47, %v1770_v52 }
 0xaa1   : > { %v1772_v54 = vmul.f32 %v1771_v53, %v1771_v53 }
 0xaa3   : > { %v1773_v55 = vsel %vm480_vm0, %v1772_v54, 0.0 }
 0xaa4   : > { %1774 = vadd.xlane.f32.xlu1 %v1773_v55 }
 0xb31   : > { %v1775_v63 = vpop.xlane.xlu1 %1774 }
 0xb32   : > { %v1776_v1 = vmul.f32 0.03125, %v1775_v63 }
 0xb34   : > { %v1777_v2 = vadd.f32 1e-06, %v1776_v1 }
 0xb36   : > { %3685 = vrsqrt.f32 %v1777_v2 }
 0xb40   : > { %v3686_v0 = vpop.eup %3685 }
 0xb41   : > { %v1779_v4 = vmul.f32 %v3686_v0, %v1771_v53 }
 0xb43   : > { %v1786_v6 = vmul.f32 %v3202_v3, %v1779_v4 }
 0xb45   : > { %v1793_v7 = vadd.f32 %v3203_v5, %v1786_v6 }
 0xb47   : > { %3449 = vmatmul.mubr.msk.f32.vlgmr.msra.gmra.mrb[16].mxu0 %vm480_vm0, %v1793_v7 }
 0xb48   : > { %3453 = vmatprep.mubr.msk.f32.mxu0 %vm3809_vm1, %v3810_v13 }
 0xc1a   : > { %v4267_v8 = vpop.f32.mrb[16].mxu0 }
 0xc1b   : > { %1951 = vrot.lane.b32.xlu0 %v4267_v8, %s3813_s22  ;;  %1873 = vrot.lane.b32.xlu1 %v4267_v8, %s4528_s24  ;;  %v3450_v9 = vpop.f32.mrb[17].mxu0  ;;  %s4534_s22 = smov 56   ;;  %s466_s24 = scalar_lea.vmem [#allocation5], %s4537_s19 }
 0xc1f   : > { %1949 = vrot.lane.b32.xlu0 %v4267_v8, %s4529_s16  ;;  %2027 = vrot.lane.b32.xlu1 %v4267_v8, %s4530_s18  ;;  %s3090_s16 = sshll.u32 %s466_s24, 4  ;;  %s4445_s16 = int_to_ptr.vmem [resolvable:$true] %s3090_s16 }
 0xc23   : > { %2029 = vrot.lane.b32.xlu0 %v4267_v8, %s4531_s14  ;;  %2105 = vrot.lane.b32.xlu1 %v4267_v8, %s4532_s30 }
 0xc27   : > { %2107 = vrot.lane.b32.xlu0 %v4267_v8, %s4533_s17  ;;  %s3739_s17 = scalar_lea.vmem %s4445_s16, 128 }
 0xc28   : > { %p3740_p11 = scmp.ne.s32.totalorder %s4445_s16, %s3739_s17 }
 0xc2a   : > { %p3741_p13 = pnand %p3740_p11, %p4538_p12 }
 0xc2c   : > { %p3742_p7 = pneg %p3741_p13 }
 0xc8d   : > { %v1952_v11 = vpop.permute.xlu0 %1951  ;;  %v1874_v12 = vpop.permute.xlu1 %1873 }
 0xc8e   : > { %3452 = vmatpush3.xpose.msk.msra.mxu0 %vm589_vm2, %v1874_v12  ;;  %3457 = vmatpush3.xpose.msk.msra.mxu1 %vm589_vm2, %v1952_v11 }
 0xc8f   : > { %3461 = vmatprep.subr.mxu0 %v3810_v13  ;;  %3466 = vmatprep.subr.mxu1 %v3810_v13 }
 0xc91   : > { %v1950_v14 = vpop.permute.xlu0 %1949  ;;  %3454 = vmatmul.mubr.msk.f32.vlgmr.msra.gmra.mrb[18].mxu0 %vm589_vm2, %v4267_v8  ;;  %v2028_v16 = vpop.permute.xlu1 %2027 }
 0xc92   : > { %3459 = vmatmul.mubr.msk.f32.vlgmr.msra.gmra.mrb[8].mxu1 %vm589_vm2, %v1950_v14  ;;  %3463 = vmatprep.mubr.msk.f32.mxu0 %vm3809_vm1, %v3810_v13  ;;  %v3217_v14 = vld [vmem:[%s4494_s6 + $0x20] sm:$0xff] }
 0xc93   : > { %3468 = vmatprep.mubr.msk.f32.mxu1 %vm3809_vm1, %v3810_v13 }
 0xc95   : > { %v2030_v15 = vpop.permute.xlu0 %2029  ;;  %v2106_v18 = vpop.permute.xlu1 %2105 }
 0xc96   : > { %3462 = vmatpush3.xpose.msk.msra.mxu0 %vm589_vm2, %v2030_v15  ;;  %v3218_v15 = vld [vmem:[%s4494_s6 + $0x28] sm:$0xff] }
 0xc97   : > { %3471 = vmatprep.subr.mxu0 %v3810_v13 }
 0xc99   : > { %v2108_v17 = vpop.permute.xlu0 %2107  ;;  %3464 = vmatmul.mubr.msk.f32.vlgmr.msra.gmra.mrb[20].mxu0 %vm589_vm2, %v2028_v16 }
 0xc9a   : > { %3467 = vmatpush3.xpose.msk.msra.mxu1 %vm589_vm2, %v2108_v17  ;;  %3473 = vmatprep.mubr.msk.f32.mxu0 %vm3809_vm1, %v3810_v13 }
 0xc9b   : > { %3476 = vmatprep.subr.mxu1 %v3810_v13 }
 0xc9d   : > { %3469 = vmatmul.mubr.msk.f32.vlgmr.msra.gmra.mrb[10].mxu1 %vm589_vm2, %v2106_v18 }
 0xc9e   : > { %3478 = vmatprep.mubr.msk.f32.mxu1 %vm3809_vm1, %v3810_v13  ;;  %3477 = vmatpush3.msra.mxu1 %v3217_v14 }
 0xc9f   : > { %3486 = vmatprep.subr.mxu1 %v3810_v13 }
 0xd64   : > { %v1945_v19 = vpop.f32.mrb[18].mxu0 }
 0xd65   : > { %v2183_v20 = vadd.f32 %v1945_v19, %v4088_v39  ;;  %v3455_v21 = vpop.f32.mrb[19].mxu0  ;;  %v2023_v22 = vpop.f32.mrb[8].mxu1 }
 0xd66   : > { %v2184_v23 = vadd.f32 %v2023_v22, %v4096_v44  ;;  %v3460_v25 = vpop.f32.mrb[9].mxu1  ;;  %v3220_v21 = vld [vmem:[%s4494_s6 + $0x38] sm:$0xff] }
 0xd67   : > { %v2187_v26 = vadd.f32 %v2183_v20, %v4090_v40  ;;  %v3219_v20 = vld [vmem:[%s4494_s6 + $0x30] sm:$0xff] }
 0xd68   : > { %v2188_v27 = vadd.f32 %v2184_v23, %v4090_v40 }
 0xd69   : > { %v2191_v28 = vsel %vm589_vm2, %v2187_v26, -inf }
 0xd6a   : > { %2192 = vmax.xlane.f32.xlu0 %v2191_v28  ;;  %v2194_v29 = vsel %vm589_vm2, %v2188_v27, -inf }
 0xd6b   : > { %2195 = vmax.xlane.f32.xlu1 %v2194_v29 }
 0xd6c   : > { %v2101_v30 = vpop.f32.mrb[20].mxu0 }
 0xd6d   : > { %v2185_v31 = vadd.f32 %v2101_v30, %v4104_v50  ;;  %v3465_v32 = vpop.f32.mrb[21].mxu0 }
 0xd6f   : > { %v2189_v39 = vadd.f32 %v2185_v31, %v4090_v40 }
 0xd70   : > { %v2179_v24 = vpop.f32.mrb[10].mxu1 }
 0xd71   : > { %v2186_v44 = vadd.f32 %v2179_v24, %v4114_v58  ;;  %v3470_v33 = vpop.f32.mrb[11].mxu1  ;;  %v2197_v34 = vsel %vm589_vm2, %v2189_v39, -inf }
 0xd72   : > { %2198 = vmax.xlane.f32.xlu0 %v2197_v34  ;;  %v3235_v34 = vld [vmem:[%s4497_s9 + $0x30] sm:$0xff] }
 0xd73   : > { %v2190_v35 = vadd.f32 %v2186_v44, %v4090_v40 }
 0xd75   : > { %v2200_v36 = vsel %vm589_vm2, %v2190_v35, -inf }
 0xd76   : > { %2201 = vmax.xlane.f32.xlu0 %v2200_v36 }
 0xdf7   : > { %v2193_v37 = vpop.xlane.xlu0 %2192 }
 0xdf8   : > { %v2203_v38 = vsub.f32 %v2187_v26, %v2193_v37  ;;  %v2196_v41 = vpop.xlane.xlu1 %2195 }
 0xdf9   : > { %v2204_v42 = vsub.f32 %v2188_v27, %v2196_v41 }
 0xdfa   : > { %v2207_v50 = vmul.f32 1.442695, %v2203_v38 }
 0xdfb   : > { %v2209_v43 = vmul.f32 1.442695, %v2204_v42 }
 0xdfc   : > { %3687 = vpow2.f32 %v2207_v50  ;;  %v3231_v50 = vld [vmem:[%s4495_s7 + $0x1] ss:$0 sm:$0xff] }
 0xdfd   : > { %3689 = vpow2.f32 %v2209_v43 }
 0xdff   : > { %v2199_v45 = vpop.xlane.xlu0 %2198 }
 0xe00   : > { %v2205_v55 = vsub.f32 %v2189_v39, %v2199_v45  ;;  %v3232_v45 = vld [vmem:[%s4496_s8 + $0x1] ss:$0 sm:$0xff] }
 0xe02   : > { %v2211_v57 = vmul.f32 1.442695, %v2205_v55  ;;  %v3243_v55 = vld [vmem:[%s4498_s10 + $0x68] sm:$0xff] }
 0xe03   : > { %v2202_v46 = vpop.xlane.xlu0 %2201 }
 0xe04   : > { %v2206_v58 = vsub.f32 %v2190_v35, %v2202_v46  ;;  %v3236_v35 = vld [vmem:[%s4497_s9 + $0x38] sm:$0xff] }
 0xe05   : > { %v3575_v36 = vpack.c.bf16 %v3236_v35, %v3235_v34 }
 0xe06   : > { %v3688_v48 = vpop.eup %3687  ;;  %v2213_v49 = vmul.f32 1.442695, %v2206_v58 }
 0xe07   : > { %v3690_v51 = vpop.eup %3689  ;;  %v2215_v52 = vsel %vm589_vm2, %v3688_v48, 0.0 }
 0xe08   : > { %3691 = vpow2.f32 %v2213_v49  ;;  %2216 = vadd.xlane.f32.xlu1 %v2215_v52  ;;  %v2218_v40 = vsel %vm589_vm2, %v3690_v51, 0.0  ;;  %v3239_v49 = vld [vmem:[%s4498_s10 + $0x48] sm:$0xff] }
 0xe09   : > { %2219 = vadd.xlane.f32.xlu0 %v2218_v40  ;;  %3693 = vpow2.f32 %v2211_v57  ;;  %v3241_v40 = vld [vmem:[%s4498_s10 + $0x58] sm:$0xff] }
 0xe12   : > { %v3692_v53 = vpop.eup %3691 }
 0xe13   : > { %v2224_v54 = vsel %vm589_vm2, %v3692_v53, 0.0  ;;  %v3694_v56 = vpop.eup %3693 }
 0xe14   : > { %2225 = vadd.xlane.f32.xlu0 %v2224_v54  ;;  %v2221_v59 = vsel %vm589_vm2, %v3694_v56, 0.0  ;;  %v3242_v54 = vld [vmem:[%s4498_s10 + $0x60] sm:$0xff] }
 0xe15   : > { %v3584_v57 = vpack.c.bf16 %v3243_v55, %v3242_v54 }
 0xe19   : > { %2240 = vrot.lane.b32.xlu1 %v4267_v8, %s3818_s25 }
 0xe2a   : > { %2390 = vrot.lane.b32.xlu0 %v4267_v8, %s4534_s22 }
 0xe3d   : > { %2222 = vadd.xlane.f32.xlu1 %v2221_v59  ;;  %v3245_v59 = vld [vmem:[%s4498_s10 + $0x78] sm:$0xff] }
 0xe4e   : > { %2540 = vrot.lane.b32.xlu1 %v4267_v8, %s4535_s15 }
 0xe52   : > { %2690 = vrot.lane.b32.xlu1 %v4267_v8, %s4536_s27  ;;  %s3250_s27 = sshll.u32 %s3914_s29, 7  ;;  %s3822_s29 = smov [#allocation5]  }
 0xe53   : > { %s4443_s30 = scalar_lea.hbm %s4501_s13, %s3250_s27  ;;  %s3743_s22 = sshll.u32 %s3822_s29, 4  ;;  %s3744_s22 = int_to_ptr.vmem [resolvable:$false] %s3743_s22 }
 0xe54   : > { %s3745_s15 = scalar_lea.vmem %s3744_s22, 256  ;;  %p3746_p10 = scmp.lt.s32.totalorder %s4445_s16, %s3744_s22 }
 0xe55   : > { %p3747_p2 = scmp.lt.s32.totalorder %s3745_s15, %s3739_s17 }
 0xe57   : > { %p3748_p4 = por %p3747_p2, %p3746_p10 }
 0xe59   : > { %p3749_p5 = pnand %p3748_p4, %p3742_p7 }
 0xe95   : > { %v2217_v60 = vpop.xlane.xlu1 %2216 }
 0xe96   : > { %3695 = vrcp.f32 %v2217_v60  ;;  %v2220_v61 = vpop.xlane.xlu0 %2219 }
 0xe97   : > { %3697 = vrcp.f32 %v2220_v61 }
 0xe99   : > { %v2241_v62 = vpop.permute.xlu1 %2240 }
 0xe9a   : > { %3472 = vmatpush3.msra.mxu0 %v2241_v62 }
 0xe9b   : > { %3481 = vmatprep.subr.mxu0 %v3810_v13 }
 0xea0   : > { %v3696_v63 = vpop.eup %3695 }
 0xea1   : > { %v2231_v1 = vmul.f32 %v3696_v63, %v3688_v48  ;;  %v2226_v2 = vpop.xlane.xlu0 %2225  ;;  %v3698_v0 = vpop.eup %3697  ;;  %v3238_v48 = vld [vmem:[%s4498_s10 + $0x40] sm:$0xff] }
 0xea2   : > { %v2232_v3 = vmul.f32 %v3698_v0, %v3690_v51  ;;  %v3240_v51 = vld [vmem:[%s4498_s10 + $0x50] sm:$0xff]  ;;  %v3578_v52 = vpack.c.bf16 %v3239_v49, %v3238_v48 }
 0xea3   : > { %3474 = vmatmul.mubr.msk.f32.vlgmr.msra.gmra.mrb[22].mxu0 %vm589_vm2, %v2231_v1 }
 0xea4   : > { %3483 = vmatprep.mubr.msk.f32.mxu0 %vm3809_vm1, %v3810_v13 }
 0xea5   : > { %v2391_v4 = vpop.permute.xlu0 %2390 }
 0xea6   : > { %3482 = vmatpush3.msra.mxu0 %v2391_v4 }
 0xea7   : > { %3484 = vmatmul.mubr.msk.f32.vlgmr.msra.gmra.mrb[24].mxu0 %vm589_vm2, %v2232_v3  ;;  %3491 = vmatprep.subr.mxu0 %v3810_v13 }
 0xea8   : > { %3493 = vmatprep.mubr.msk.f32.mxu0 %vm3809_vm1, %v3810_v13 }
 0xeca   : > { %v2223_v5 = vpop.xlane.xlu1 %2222 }
 0xecb   : > { %3699 = vrcp.f32 %v2223_v5 }
 0xecc   : > { %3701 = vrcp.f32 %v2226_v2 }
 0xece   : > { %v2541_v6 = vpop.permute.xlu1 %2540 }
 0xecf   : > { %3492 = vmatpush3.msra.mxu0 %v2541_v6 }
 0xed0   : > { %3501 = vmatprep.subr.mxu0 %v3810_v13 }
 0xed2   : > { %v2691_v11 = vpop.permute.xlu1 %2690 }
 0xed5   : > { %v3700_v7 = vpop.eup %3699 }
 0xed6   : > { %v2233_v8 = vmul.f32 %v3700_v7, %v3694_v56  ;;  %v3702_v9 = vpop.eup %3701  ;;  %v3244_v56 = vld [vmem:[%s4498_s10 + $0x70] sm:$0xff] }
 0xed7   : > { %v2234_v12 = vmul.f32 %v3702_v9, %v3692_v53  ;;  %v3581_v53 = vpack.c.bf16 %v3241_v40, %v3240_v51  ;;  %v3587_v60 = vpack.c.bf16 %v3245_v59, %v3244_v56 }
 0xed8   : > { %3494 = vmatmul.mubr.msk.f32.vlgmr.msra.gmra.mrb[26].mxu0 %vm589_vm2, %v2233_v8 }
 0xed9   : > { %3502 = vmatpush3.msra.mxu0 %v2691_v11  ;;  %3503 = vmatprep.mubr.msk.f32.mxu0 %vm3809_vm1, %v3810_v13 }
 0xeda   : > { %3571 = vmatprep.subr.bf16.mxu0 %v3808_v10 }
 0xedc   : > { %3504 = vmatmul.mubr.msk.f32.vlgmr.msra.gmra.mrb[28].mxu0 %vm589_vm2, %v2234_v12 }
 0xedd   : > { %3519 = vmatprep.mubr.msk.f32.mxu0 %vm3809_vm1, %v3810_v13 }
 0xf76   : > { %v2312_v16 = vpop.f32.mrb[22].mxu0 }
 0xf77   : > { %v3475_v17 = vpop.f32.mrb[23].mxu0  ;;  %3479 = vmatmul.mubr.msk.f32.vlgmr.msra.gmra.mrb[12].mxu1 %vm589_vm2, %v2312_v16 }
 0xf78   : > { %3487 = vmatpush3.msra.mxu1 %v3218_v15  ;;  %3488 = vmatprep.mubr.msk.f32.mxu1 %vm3809_vm1, %v3810_v13 }
 0xf79   : > { %3496 = vmatprep.subr.mxu1 %v3810_v13 }
 0xf7a   : > { %v2462_v18 = vpop.f32.mrb[24].mxu0 }
 0xf7b   : > { %v3485_v19 = vpop.f32.mrb[25].mxu0 }
 0xf7f   : > { %3489 = vmatmul.mubr.msk.f32.vlgmr.msra.gmra.mrb[12].mxu1 %vm589_vm2, %v2462_v18 }
 0xf80   : > { %3497 = vmatpush3.msra.mxu1 %v3219_v20  ;;  %3498 = vmatprep.mubr.msk.f32.mxu1 %vm3809_vm1, %v3810_v13 }
 0xf81   : > { %3506 = vmatprep.subr.mxu1 %v3810_v13 }
 0xfab   : > { %v2612_v22 = vpop.f32.mrb[26].mxu0 }
 0xfac   : > { %v3495_v23 = vpop.f32.mrb[27].mxu0  ;;  %3499 = vmatmul.mubr.msk.f32.vlgmr.msra.gmra.mrb[12].mxu1 %vm589_vm2, %v2612_v22 }
 0xfad   : > { %3507 = vmatpush3.msra.mxu1 %v3220_v21  ;;  %3508 = vmatprep.mubr.msk.f32.mxu1 %vm3809_vm1, %v3810_v13 }
 0xfae   : > { %3577 = vmatprep.subr.bf16.mxu1 %v3808_v10 }
 0xfaf   : > { %v2762_v25 = vpop.f32.mrb[28].mxu0 }
 0xfb0   : > { %v3505_v26 = vpop.f32.mrb[29].mxu0 }
 0xfb4   : > { %3509 = vmatmul.mubr.msk.f32.vlgmr.msra.gmra.mrb[12].mxu1 %vm589_vm2, %v2762_v25  ;;  %v3247_v25 = vld [vmem:[%s4499_s11] ss:$0 sm:$0xff] }
 0xfb5   : > { %3538 = vmatprep.mubr.msk.f32.mxu1 %vm3809_vm1, %v3810_v13  ;;  %v3233_v13 = vld [vmem:[%s4497_s9 + $0x20] sm:$0xff]  ;;  %3579 = vmatpush3.bf16.msra.mxu1 %v3578_v52 }
 0xfb6   : > { %3580 = vmatprep.subr.bf16.mxu1 %v3808_v10 }
 0xfb9   : > { %3582 = vmatpush3.bf16.msra.mxu1 %v3581_v53 }
 0xfba   : > { %3583 = vmatprep.subr.bf16.mxu1 %v3808_v10 }
 0xfbd   : > { %3585 = vmatpush3.bf16.msra.mxu1 %v3584_v57 }
 0xfbe   : > { %3586 = vmatprep.subr.bf16.mxu1 %v3808_v10 }
 0xfc1   : > { %3588 = vmatpush3.bf16.msra.mxu1 %v3587_v60 }
0x1087   : > { %v2835_v27 = vpop.f32.mrb[12].mxu1 }
0x1088   : > { %v4373_v28 = vadd.f32 %v2835_v27, %v4238_v47  ;;  %v3510_v29 = vpop.f32.mrb[13].mxu1  ;;  %v3234_v47 = vld [vmem:[%s4497_s9 + $0x28] sm:$0xff]  ;;  %v3248_v27 = vld [vmem:[%s4500_s12] ss:$0 sm:$0xff] }
0x1089   : > { %v3572_v33 = vpack.c.bf16 %v3234_v47, %v3233_v13 }
0x108a   : > { %v2844_v30 = vsel %vm480_vm0, %v4373_v28, 0.0 }
0x108b   : > { %2845 = vadd.xlane.f32.xlu0 %v2844_v30  ;;  %3573 = vmatpush3.bf16.msra.mxu0 %v3572_v33 }
0x108c   : > { %3574 = vmatprep.subr.bf16.mxu0 %v3808_v10 }
0x108f   : > { %3576 = vmatpush3.bf16.msra.mxu0 %v3575_v36 }
0x1118   : > { %v2846_v31 = vpop.xlane.xlu0 %2845 }
0x1119   : > { %v2847_v32 = vmul.f32 0.03125, %v2846_v31 }
0x111b   : > { %v2848_v39 = vsub.f32 %v4373_v28, %v2847_v32 }
0x111d   : > { %v2849_v24 = vmul.f32 %v2848_v39, %v2848_v39 }
0x111f   : > { %v2850_v44 = vsel %vm480_vm0, %v2849_v24, 0.0 }
0x1120   : > { %2851 = vadd.xlane.f32.xlu1 %v2850_v44 }
0x11ad   : > { %v2852_v37 = vpop.xlane.xlu1 %2851 }
0x11ae   : > { %v2853_v38 = vmul.f32 0.03125, %v2852_v37 }
0x11b0   : > { %v2854_v41 = vadd.f32 1e-06, %v2853_v38 }
0x11b2   : > { %3703 = vrsqrt.f32 %v2854_v41 }
0x11bc   : > { %v3704_v42 = vpop.eup %3703 }
0x11bd   : > { %v2856_v43 = vmul.f32 %v3704_v42, %v2848_v39 }
0x11bf   : > { %v2863_v46 = vmul.f32 %v3231_v50, %v2856_v43 }
0x11c1   : > { %v2870_v58 = vadd.f32 %v3232_v45, %v2863_v46 }
0x11c3   : > { %3520 = vmatmul.mubr.msk.f32.vlgmr.msra.gmra.mrb[30].mxu0 %vm480_vm0, %v2870_v58 }
0x1296   : > { %v2945_v61 = vpop.f32.mrb[30].mxu0 }
0x1297   : > { %2959 = vrot.lane.b32.xlu0 %v2945_v61, %s3818_s25  ;;  %v3521_v62 = vpop.f32.mrb[31].mxu0  ;;  %v2949_v63 = vmul.f32 %v2945_v61, %v2945_v61  ;;  %s3077_s25 = scalar_lea.sflag [#allocation4], %s3998_s23 }
0x1299   : > { %v2950_v1 = vmul.f32 %v2949_v63, %v2945_v61 }
0x129b   : > { %v2951_v2 = vmul.f32 0.044715, %v2950_v1 }
0x129d   : > { %v2952_v0 = vadd.f32 %v2951_v2, %v2945_v61 }
0x129f   : > { %v2953_v3 = vmul.f32 0.7978846, %v2952_v0 }
0x12a1   : > { %3705 = vtanh.f32 %v2953_v3 }
0x12ab   : > { %v3706_v4 = vpop.eup %3705 }
0x12ac   : > { %v2955_v5 = vadd.f32 1.0, %v3706_v4 }
0x12ae   : > { %v2956_v6 = vmul.f32 0.5, %v2955_v5 }
0x12b0   : > { %v2957_v7 = vmul.f32 %v2956_v6, %v2945_v61 }
0x1309   : > { %v2960_v8 = vpop.permute.xlu0 %2959 }
0x130a   : > { %v2962_v9 = vmul.f32 %v2960_v8, %v2957_v7 }
0x130c   : > { %3539 = vmatmul.mubr.msk.f32.vlgmr.msra.gmra.mrb[14].mxu1 %vm1688_vm3, %v2962_v9 }
0x13df   : > { %v3041_v10 = vpop.f32.mrb[14].mxu1 }
0x13e0   : > { %v3045_v11 = vadd.f32 %v4373_v28, %v3041_v10  ;;  %v3540_v12 = vpop.f32.mrb[15].mxu1 }
0x13e2   : > { %v3048_v14 = vsel %vm480_vm0, %v3045_v11, 0.0 }
0x13e3   : > { %3049 = vadd.xlane.f32.xlu1 %v3048_v14 }
0x1470   : > { %v3050_v15 = vpop.xlane.xlu1 %3049 }
0x1471   : > { %v3051_v16 = vmul.f32 0.03125, %v3050_v15 }
0x1473   : > { %v3052_v17 = vsub.f32 %v3045_v11, %v3051_v16 }
0x1475   : > { %v3053_v18 = vmul.f32 %v3052_v17, %v3052_v17 }
0x1477   : > { %v3054_v19 = vsel %vm480_vm0, %v3053_v18, 0.0 }
0x1478   : > { %3055 = vadd.xlane.f32.xlu1 %v3054_v19 }
0x1505   : > { %v3056_v20 = vpop.xlane.xlu1 %3055 }
0x1506   : > { %v3057_v21 = vmul.f32 0.03125, %v3056_v20 }
0x1508   : > { %v3058_v22 = vadd.f32 1e-06, %v3057_v21 }
0x150a   : > { %3707 = vrsqrt.f32 %v3058_v22 }
0x1514   : > { %v3708_v23 = vpop.eup %3707 }
0x1515   : > { %v3060_v26 = vmul.f32 %v3708_v23, %v3052_v17 }
0x1517   : > { %v3067_v28 = vmul.f32 %v3247_v25, %v3060_v26 }
0x1519   : > { %v3074_v29 = vadd.f32 %v3248_v27, %v3067_v28 }
0x151b   : > { %3075 = vst.msk [vmem:[%s466_s24] sm:$0xff] %vm480_vm0, %v3074_v29 }
0x151c   : > { %3752 = shalt.err (!%p3749_p5)
}
0x151d   : > { %s3753_s23 = scalar_lea.hbm %s4443_s30, 128  ;;  %s3757_s24 = scalar_lea.hbm %s4501_s13, 256 }
0x151e   : > { %p3754_p8 = scmp.ne.s32.totalorder %s4443_s30, %s3753_s23  ;;  %p3758_p1 = scmp.lt.u32.totalorder %s4443_s30, %s4501_s13 }
0x151f   : > { %p3759_p3 = scmp.lt.u32.totalorder %s3757_s24, %s3753_s23  ;;  %p3761_p11 = scmp.lt.u32.totalorder %s3753_s23, %s4443_s30 }
0x1520   : > { %p3755_p9 = pnand %p3754_p8, %p4538_p12 }
0x1521   : > { %p3760_p6 = por %p3759_p3, %p3758_p1 }
0x1522   : > { %p3756_p0 = pneg %p3755_p9 }
0x1523   : > { %p3762_p13 = por %p3761_p11, %p3760_p6 }
0x1525   : > { %p3763_p7 = pnand %p3762_p13, %p3756_p0 }
0x1527   : > { %3766 = shalt.err (!%p3763_p7)
}
0x1528   : > { %3605 = dma.vmem_to_hbm [thread:$0]  (%p4538_p12), %s4445_s16, 128, %s4443_s30, %s3077_s25  }
0x1529 PF: > { %s4539_s17 = sld [smem:[#allocation8_spill]]  ;;  %p4540_p10 = scmp.ne.s32.totalorder %s4524_s21, 0 }
0x152a   : > { %p4541_p2 = scmp.ge.s32.totalorder %s3805_s28, 2 }
0x152c   : > { %p3612_p4 = pnand %p4541_p2, %p4540_p10 }
0x152f   : > { %s3102_s29 = sand.u32 1, %s4539_s17  }
0x1530   : > { %s3103_s22 = scalar_lea.sflag [#allocation4], %s3102_s29 }
0x1531   : > { %3788 = dma.done.wait (!%p3612_p4), %s3103_s22, 128  }
0x1532   : > { %3790 = vsyncadd (!%p3612_p4), %s3103_s22, 4294967168  ;;  %s4542_s28 = sld [smem:[#allocation10_spill]]  ;;  %s4543_s15 = sld [smem:[#allocation9_spill]] }
0x1533   : > { %s4544_s27 = sld [smem:[#allocation11_spill]]  ;;  %s4545_s25 = smov %s3797_s26 }
0x1538   : > { %p26_p5 = scmp.ge.s32.totalorder %s4542_s28, 4   ;;  %s4546_s26 = smov %s4543_s15 }
0x153a   :  { %28 = sbr.rel (!%p26_p5) target bundleno = 5 (0x5), region = 128 }
0x1541   :  { %3108 = vsyncpa [#allocation3], 1 }
0x1542   :  { %3110 = vsyncpa [#allocation3 + $0x1], 1 }
0x1543   :  { %3111 = vsyncpa [#allocation4], 1 }
0x1544   :  { %3113 = vsyncpa [#allocation4 + $0x1], 1 }

</bundles_post_ra>
